<compile_context>
chip_gen: v5e
topology: v5e:2x2
jax: 0.10.0
libtpu: 0.0.40
codegen_flags: <defaults>
</compile_context>

<pallas_src>
import functools
import math

import jax
import jax.numpy as jnp
from jax.experimental import pallas as pl
from jax.experimental.pallas import tpu as pltpu

DB = 20        # hidden width
DEPTH = 8      # number of hidden (tanh) layers
DX = 2         # input features
DY = 1         # output features
FEAT = 24      # padded feature width (sublane axis; multiple of 8 for f32)
OUT_ROWS = 8   # sublane-aligned slab computed for the final layer (>= DY)


def fcnet_kernel(x_ref, w_ref, b_ref, o_ref):
    # x_ref: (DX, TM)   w_ref: (DEPTH+1, FEAT, FEAT)   b_ref: (DEPTH+1, FEAT, 1)
    # o_ref: (DY, TM)
    x = x_ref[...].astype(jnp.float32)                     # (DX, TM)

    # Layer 0: contract directly over the DX real input features (the padded
    # columns of W0 are zero, so this is exact) — no zero-padded h staging.
    w0 = w_ref[0]                                          # (FEAT, FEAT)
    h = jnp.tanh(
        jnp.dot(w0[:, :DX], x, preferred_element_type=jnp.float32)
        + b_ref[0]                                         # (FEAT, 1) lane-broadcast
    )                                                      # (FEAT, TM)

    # Hidden layers 1..DEPTH-1.
    for i in range(1, DEPTH):
        h = jnp.tanh(
            jnp.dot(w_ref[i], h, preferred_element_type=jnp.float32)
            + b_ref[i]
        )

    # Output layer: only row 0 survives; compute an 8-sublane-aligned slab.
    w_out = w_ref[DEPTH]                                   # (FEAT, FEAT)
    b_out = b_ref[DEPTH]                                   # (FEAT, 1)
    out = (
        jnp.dot(w_out[:OUT_ROWS, :], h, preferred_element_type=jnp.float32)
        + b_out[:OUT_ROWS]
    )                                                      # (OUT_ROWS, TM)
    o_ref[...] = out[:DY, :].astype(o_ref.dtype)


@functools.partial(jax.jit, static_argnames=("tm",))
def fcnet_forward_fm(x_t, w_stack, b_stack, *, tm=8192):
    """Feature-major forward: x_t (DX, N) float32 -> (DY, N) float32.

    N must be a multiple of `tm` (use fcnet_forward for arbitrary batch)."""
    n = x_t.shape[1]
    grid = (n // tm,)
    return pl.pallas_call(
        fcnet_kernel,
        out_shape=jax.ShapeDtypeStruct((DY, n), jnp.float32),
        grid=grid,
        in_specs=[
            pl.BlockSpec((DX, tm), lambda i: (0, i)),
            # Full (grid-invariant) weight / bias blocks: fetched once, resident.
            pl.BlockSpec((DEPTH + 1, FEAT, FEAT), lambda i: (0, 0, 0)),
            pl.BlockSpec((DEPTH + 1, FEAT, 1), lambda i: (0, 0, 0)),
        ],
        out_specs=pl.BlockSpec((DY, tm), lambda i: (0, i)),
        compiler_params=pltpu.CompilerParams(
            dimension_semantics=("parallel",)
        ),
    )(x_t, w_stack, b_stack)


@functools.partial(jax.jit, static_argnames=("tm",))
def fcnet_forward(x, w_stack, b_stack, *, tm=8192):
    """Batch-major forward matching the PyTorch module: (N, DX) -> (N, DY)."""
    n = x.shape[0]
    n_pad = pl.cdiv(n, tm) * tm                            # handle any batch size
    # Tiny feature-major staging array: (DX, n_pad) — real data only.
    x_t = jnp.zeros((DX, n_pad), dtype=jnp.float32).at[:, :n].set(x.T)
    out_t = fcnet_forward_fm(x_t, w_stack, b_stack, tm=tm)
    return out_t[:, :n].T                                  # (N, DY)


def init_params(key):
    """Xavier-normal weights (std = sqrt(2/(in+out))), zero biases, stacked in
    nn.Linear (out, in) orientation into padded (DEPTH+1, FEAT, FEAT) /
    (DEPTH+1, FEAT, 1) arrays.  Padded rows/columns are exactly zero — the
    kernel's correctness relies on this invariant."""
    dims = []
    for i in range(DEPTH + 1):
        if i == 0:
            dims.append((DX, DB))
        elif i == DEPTH:
            dims.append((DB, DY))
        else:
            dims.append((DB, DB))

    w_stack = jnp.zeros((DEPTH + 1, FEAT, FEAT), dtype=jnp.float32)
    b_stack = jnp.zeros((DEPTH + 1, FEAT, 1), dtype=jnp.float32)
    keys = jax.random.split(key, DEPTH + 1)
    w_list = []
    for i, (d_in, d_out) in enumerate(dims):
        std = math.sqrt(2.0 / (d_in + d_out))
        w = jax.random.normal(keys[i], (d_out, d_in), dtype=jnp.float32) * std
        w_list.append(w)
        w_stack = w_stack.at[i, :d_out, :d_in].set(w)
        # biases stay zero (matches randominit's fill_(0.0))
    return w_stack, b_stack, w_list


def fcnet_reference(x, w_list):
    h = x
    for i in range(DEPTH):
        h = jnp.tanh(jnp.dot(h, w_list[i].T,
                             precision=jax.lax.Precision.HIGHEST))
    return jnp.dot(h, w_list[DEPTH].T, precision=jax.lax.Precision.HIGHEST)


if __name__ == "__main__":
    key = jax.random.PRNGKey(0)
    k_x, k_p = jax.random.split(key)

    N = 2000                                 # batch of 2-D input points (non-multiple of tm)
    x = jax.random.normal(k_x, (N, DX), dtype=jnp.float32)

    w_stack, b_stack, w_list = init_params(k_p)

    # Small demo tile so the grid still has 2 steps (keeps both TensorCores
    # busy on v7x); for large N use the tm=8192 default.
    out = fcnet_forward(x, w_stack, b_stack, tm=1024)
    out = jax.block_until_ready(out)

    ref = fcnet_reference(x, w_list)
    assert out.shape == (N, DY)
    assert jnp.allclose(out, ref, atol=1e-5, rtol=1e-4), "mismatch vs reference"

    print("KERNEL_OK")
</pallas_src>

<mosaic_0001>
module attributes {stable_mosaic.version = 11 : i64} {
  func.func @fcnet_kernel(%arg0: i32, %arg1: memref<2x1024xf32, #tpu.memory_space<vmem>>, %arg2: memref<9x24x24xf32, #tpu.memory_space<vmem>>, %arg3: memref<9x24x1xf32, #tpu.memory_space<vmem>>, %arg4: memref<1x1024xf32, #tpu.memory_space<vmem>>) attributes {dimension_semantics = [#tpu.dimension_semantics<parallel>], iteration_bounds = array<i64: 2>, scalar_prefetch = 0 : i64, scratch_operands = 0 : i64, tpu.core_type = #tpu.core_type<tc>, window_params = [{transform_indices = @transform_0, window_bounds = array<i64: 2, 1024>}, {pipeline_mode = #tpu.pipeline_mode<synchronous>, transform_indices = @transform_1, window_bounds = array<i64: 9, 24, 24>}, {pipeline_mode = #tpu.pipeline_mode<synchronous>, transform_indices = @transform_2, window_bounds = array<i64: 9, 24, 1>}, {transform_indices = @transform_3, window_bounds = array<i64: 1, 1024>}]} {
    %c0 = arith.constant 0 : index
    %c0_0 = arith.constant 0 : index
    %0 = vector.load %arg1[%c0, %c0_0] : memref<2x1024xf32, #tpu.memory_space<vmem>>, vector<2x1024xf32>
    %c0_1 = arith.constant 0 : index
    %c0_2 = arith.constant 0 : index
    %c0_3 = arith.constant 0 : index
    %1 = vector.load %arg2[%c0_1, %c0_2, %c0_3] : memref<9x24x24xf32, #tpu.memory_space<vmem>>, vector<1x24x24xf32>
    %2 = vector.shape_cast %1 : vector<1x24x24xf32> to vector<24x24xf32>
    %3 = vector.extract_strided_slice %2 {offsets = [0, 0], sizes = [24, 2], strides = [1, 1]} : vector<24x24xf32> to vector<24x2xf32>
    %cst = arith.constant dense<0.000000e+00> : vector<24x1024xf32>
    %4 = tpu.matmul %3, %0, %cst {dimension_numbers = #tpu.dot_dimension_numbers<[1], [0], [0], [1], [0, 0, 1, 1], [], []>} : vector<24x2xf32>, vector<2x1024xf32>, vector<24x1024xf32> -> vector<24x1024xf32>
    %c0_4 = arith.constant 0 : index
    %c0_5 = arith.constant 0 : index
    %c0_6 = arith.constant 0 : index
    %5 = vector.load %arg3[%c0_4, %c0_5, %c0_6] : memref<9x24x1xf32, #tpu.memory_space<vmem>>, vector<1x24x1xf32>
    %6 = vector.shape_cast %5 : vector<1x24x1xf32> to vector<24x1xf32>
    %7 = vector.broadcast %6 : vector<24x1xf32> to vector<24x1024xf32>
    %8 = arith.addf %4, %7 : vector<24x1024xf32>
    %9 = math.tanh %8 : vector<24x1024xf32>
    %c1 = arith.constant 1 : index
    %c0_7 = arith.constant 0 : index
    %c0_8 = arith.constant 0 : index
    %10 = vector.load %arg2[%c1, %c0_7, %c0_8] : memref<9x24x24xf32, #tpu.memory_space<vmem>>, vector<1x24x24xf32>
    %11 = vector.shape_cast %10 : vector<1x24x24xf32> to vector<24x24xf32>
    %cst_9 = arith.constant dense<0.000000e+00> : vector<24x1024xf32>
    %12 = tpu.matmul %11, %9, %cst_9 {dimension_numbers = #tpu.dot_dimension_numbers<[1], [0], [0], [1], [0, 0, 1, 1], [], []>} : vector<24x24xf32>, vector<24x1024xf32>, vector<24x1024xf32> -> vector<24x1024xf32>
    %c1_10 = arith.constant 1 : index
    %c0_11 = arith.constant 0 : index
    %c0_12 = arith.constant 0 : index
    %13 = vector.load %arg3[%c1_10, %c0_11, %c0_12] : memref<9x24x1xf32, #tpu.memory_space<vmem>>, vector<1x24x1xf32>
    %14 = vector.shape_cast %13 : vector<1x24x1xf32> to vector<24x1xf32>
    %15 = vector.broadcast %14 : vector<24x1xf32> to vector<24x1024xf32>
    %16 = arith.addf %12, %15 : vector<24x1024xf32>
    %17 = math.tanh %16 : vector<24x1024xf32>
    %c2 = arith.constant 2 : index
    %c0_13 = arith.constant 0 : index
    %c0_14 = arith.constant 0 : index
    %18 = vector.load %arg2[%c2, %c0_13, %c0_14] : memref<9x24x24xf32, #tpu.memory_space<vmem>>, vector<1x24x24xf32>
    %19 = vector.shape_cast %18 : vector<1x24x24xf32> to vector<24x24xf32>
    %cst_15 = arith.constant dense<0.000000e+00> : vector<24x1024xf32>
    %20 = tpu.matmul %19, %17, %cst_15 {dimension_numbers = #tpu.dot_dimension_numbers<[1], [0], [0], [1], [0, 0, 1, 1], [], []>} : vector<24x24xf32>, vector<24x1024xf32>, vector<24x1024xf32> -> vector<24x1024xf32>
    %c2_16 = arith.constant 2 : index
    %c0_17 = arith.constant 0 : index
    %c0_18 = arith.constant 0 : index
    %21 = vector.load %arg3[%c2_16, %c0_17, %c0_18] : memref<9x24x1xf32, #tpu.memory_space<vmem>>, vector<1x24x1xf32>
    %22 = vector.shape_cast %21 : vector<1x24x1xf32> to vector<24x1xf32>
    %23 = vector.broadcast %22 : vector<24x1xf32> to vector<24x1024xf32>
    %24 = arith.addf %20, %23 : vector<24x1024xf32>
    %25 = math.tanh %24 : vector<24x1024xf32>
    %c3 = arith.constant 3 : index
    %c0_19 = arith.constant 0 : index
    %c0_20 = arith.constant 0 : index
    %26 = vector.load %arg2[%c3, %c0_19, %c0_20] : memref<9x24x24xf32, #tpu.memory_space<vmem>>, vector<1x24x24xf32>
    %27 = vector.shape_cast %26 : vector<1x24x24xf32> to vector<24x24xf32>
    %cst_21 = arith.constant dense<0.000000e+00> : vector<24x1024xf32>
    %28 = tpu.matmul %27, %25, %cst_21 {dimension_numbers = #tpu.dot_dimension_numbers<[1], [0], [0], [1], [0, 0, 1, 1], [], []>} : vector<24x24xf32>, vector<24x1024xf32>, vector<24x1024xf32> -> vector<24x1024xf32>
    %c3_22 = arith.constant 3 : index
    %c0_23 = arith.constant 0 : index
    %c0_24 = arith.constant 0 : index
    %29 = vector.load %arg3[%c3_22, %c0_23, %c0_24] : memref<9x24x1xf32, #tpu.memory_space<vmem>>, vector<1x24x1xf32>
    %30 = vector.shape_cast %29 : vector<1x24x1xf32> to vector<24x1xf32>
    %31 = vector.broadcast %30 : vector<24x1xf32> to vector<24x1024xf32>
    %32 = arith.addf %28, %31 : vector<24x1024xf32>
    %33 = math.tanh %32 : vector<24x1024xf32>
    %c4 = arith.constant 4 : index
    %c0_25 = arith.constant 0 : index
    %c0_26 = arith.constant 0 : index
    %34 = vector.load %arg2[%c4, %c0_25, %c0_26] : memref<9x24x24xf32, #tpu.memory_space<vmem>>, vector<1x24x24xf32>
    %35 = vector.shape_cast %34 : vector<1x24x24xf32> to vector<24x24xf32>
    %cst_27 = arith.constant dense<0.000000e+00> : vector<24x1024xf32>
    %36 = tpu.matmul %35, %33, %cst_27 {dimension_numbers = #tpu.dot_dimension_numbers<[1], [0], [0], [1], [0, 0, 1, 1], [], []>} : vector<24x24xf32>, vector<24x1024xf32>, vector<24x1024xf32> -> vector<24x1024xf32>
    %c4_28 = arith.constant 4 : index
    %c0_29 = arith.constant 0 : index
    %c0_30 = arith.constant 0 : index
    %37 = vector.load %arg3[%c4_28, %c0_29, %c0_30] : memref<9x24x1xf32, #tpu.memory_space<vmem>>, vector<1x24x1xf32>
    %38 = vector.shape_cast %37 : vector<1x24x1xf32> to vector<24x1xf32>
    %39 = vector.broadcast %38 : vector<24x1xf32> to vector<24x1024xf32>
    %40 = arith.addf %36, %39 : vector<24x1024xf32>
    %41 = math.tanh %40 : vector<24x1024xf32>
    %c5 = arith.constant 5 : index
    %c0_31 = arith.constant 0 : index
    %c0_32 = arith.constant 0 : index
    %42 = vector.load %arg2[%c5, %c0_31, %c0_32] : memref<9x24x24xf32, #tpu.memory_space<vmem>>, vector<1x24x24xf32>
    %43 = vector.shape_cast %42 : vector<1x24x24xf32> to vector<24x24xf32>
    %cst_33 = arith.constant dense<0.000000e+00> : vector<24x1024xf32>
    %44 = tpu.matmul %43, %41, %cst_33 {dimension_numbers = #tpu.dot_dimension_numbers<[1], [0], [0], [1], [0, 0, 1, 1], [], []>} : vector<24x24xf32>, vector<24x1024xf32>, vector<24x1024xf32> -> vector<24x1024xf32>
    %c5_34 = arith.constant 5 : index
    %c0_35 = arith.constant 0 : index
    %c0_36 = arith.constant 0 : index
    %45 = vector.load %arg3[%c5_34, %c0_35, %c0_36] : memref<9x24x1xf32, #tpu.memory_space<vmem>>, vector<1x24x1xf32>
    %46 = vector.shape_cast %45 : vector<1x24x1xf32> to vector<24x1xf32>
    %47 = vector.broadcast %46 : vector<24x1xf32> to vector<24x1024xf32>
    %48 = arith.addf %44, %47 : vector<24x1024xf32>
    %49 = math.tanh %48 : vector<24x1024xf32>
    %c6 = arith.constant 6 : index
    %c0_37 = arith.constant 0 : index
    %c0_38 = arith.constant 0 : index
    %50 = vector.load %arg2[%c6, %c0_37, %c0_38] : memref<9x24x24xf32, #tpu.memory_space<vmem>>, vector<1x24x24xf32>
    %51 = vector.shape_cast %50 : vector<1x24x24xf32> to vector<24x24xf32>
    %cst_39 = arith.constant dense<0.000000e+00> : vector<24x1024xf32>
    %52 = tpu.matmul %51, %49, %cst_39 {dimension_numbers = #tpu.dot_dimension_numbers<[1], [0], [0], [1], [0, 0, 1, 1], [], []>} : vector<24x24xf32>, vector<24x1024xf32>, vector<24x1024xf32> -> vector<24x1024xf32>
    %c6_40 = arith.constant 6 : index
    %c0_41 = arith.constant 0 : index
    %c0_42 = arith.constant 0 : index
    %53 = vector.load %arg3[%c6_40, %c0_41, %c0_42] : memref<9x24x1xf32, #tpu.memory_space<vmem>>, vector<1x24x1xf32>
    %54 = vector.shape_cast %53 : vector<1x24x1xf32> to vector<24x1xf32>
    %55 = vector.broadcast %54 : vector<24x1xf32> to vector<24x1024xf32>
    %56 = arith.addf %52, %55 : vector<24x1024xf32>
    %57 = math.tanh %56 : vector<24x1024xf32>
    %c7 = arith.constant 7 : index
    %c0_43 = arith.constant 0 : index
    %c0_44 = arith.constant 0 : index
    %58 = vector.load %arg2[%c7, %c0_43, %c0_44] : memref<9x24x24xf32, #tpu.memory_space<vmem>>, vector<1x24x24xf32>
    %59 = vector.shape_cast %58 : vector<1x24x24xf32> to vector<24x24xf32>
    %cst_45 = arith.constant dense<0.000000e+00> : vector<24x1024xf32>
    %60 = tpu.matmul %59, %57, %cst_45 {dimension_numbers = #tpu.dot_dimension_numbers<[1], [0], [0], [1], [0, 0, 1, 1], [], []>} : vector<24x24xf32>, vector<24x1024xf32>, vector<24x1024xf32> -> vector<24x1024xf32>
    %c7_46 = arith.constant 7 : index
    %c0_47 = arith.constant 0 : index
    %c0_48 = arith.constant 0 : index
    %61 = vector.load %arg3[%c7_46, %c0_47, %c0_48] : memref<9x24x1xf32, #tpu.memory_space<vmem>>, vector<1x24x1xf32>
    %62 = vector.shape_cast %61 : vector<1x24x1xf32> to vector<24x1xf32>
    %63 = vector.broadcast %62 : vector<24x1xf32> to vector<24x1024xf32>
    %64 = arith.addf %60, %63 : vector<24x1024xf32>
    %65 = math.tanh %64 : vector<24x1024xf32>
    %c8 = arith.constant 8 : index
    %c0_49 = arith.constant 0 : index
    %c0_50 = arith.constant 0 : index
    %66 = vector.load %arg2[%c8, %c0_49, %c0_50] : memref<9x24x24xf32, #tpu.memory_space<vmem>>, vector<1x24x24xf32>
    %67 = vector.shape_cast %66 : vector<1x24x24xf32> to vector<24x24xf32>
    %c8_51 = arith.constant 8 : index
    %c0_52 = arith.constant 0 : index
    %c0_53 = arith.constant 0 : index
    %68 = vector.load %arg3[%c8_51, %c0_52, %c0_53] : memref<9x24x1xf32, #tpu.memory_space<vmem>>, vector<1x24x1xf32>
    %69 = vector.shape_cast %68 : vector<1x24x1xf32> to vector<24x1xf32>
    %70 = vector.extract_strided_slice %67 {offsets = [0, 0], sizes = [8, 24], strides = [1, 1]} : vector<24x24xf32> to vector<8x24xf32>
    %cst_54 = arith.constant dense<0.000000e+00> : vector<8x1024xf32>
    %71 = tpu.matmul %70, %65, %cst_54 {dimension_numbers = #tpu.dot_dimension_numbers<[1], [0], [0], [1], [0, 0, 1, 1], [], []>} : vector<8x24xf32>, vector<24x1024xf32>, vector<8x1024xf32> -> vector<8x1024xf32>
    %72 = vector.extract_strided_slice %69 {offsets = [0, 0], sizes = [8, 1], strides = [1, 1]} : vector<24x1xf32> to vector<8x1xf32>
    %73 = vector.broadcast %72 : vector<8x1xf32> to vector<8x1024xf32>
    %74 = arith.addf %71, %73 : vector<8x1024xf32>
    %75 = vector.extract_strided_slice %74 {offsets = [0, 0], sizes = [1, 1024], strides = [1, 1]} : vector<8x1024xf32> to vector<1x1024xf32>
    %c0_55 = arith.constant 0 : index
    %c0_56 = arith.constant 0 : index
    %76 = vector.load %arg4[%c0_55, %c0_56] : memref<1x1024xf32, #tpu.memory_space<vmem>>, vector<1x1024xf32>
    tpu.vector_store %arg4[%c0_55, %c0_56], %75 {strides = array<i32>} : memref<1x1024xf32, #tpu.memory_space<vmem>>, vector<1x1024xf32>,
    return
  }
  func.func @transform_0(%arg0: i32) -> (i32, i32) {
    %c0_i32 = arith.constant 0 : i32
    %c0_i32_0 = arith.constant 0 : i32
    return %c0_i32, %arg0 : i32, i32
  }
  func.func @transform_1(%arg0: i32) -> (i32, i32, i32) {
    %c0_i32 = arith.constant 0 : i32
    %c0_i32_0 = arith.constant 0 : i32
    %c0_i32_1 = arith.constant 0 : i32
    %c0_i32_2 = arith.constant 0 : i32
    return %c0_i32, %c0_i32_0, %c0_i32_1 : i32, i32, i32
  }
  func.func @transform_2(%arg0: i32) -> (i32, i32, i32) {
    %c0_i32 = arith.constant 0 : i32
    %c0_i32_0 = arith.constant 0 : i32
    %c0_i32_1 = arith.constant 0 : i32
    %c0_i32_2 = arith.constant 0 : i32
    return %c0_i32, %c0_i32_0, %c0_i32_1 : i32, i32, i32
  }
  func.func @transform_3(%arg0: i32) -> (i32, i32) {
    %c0_i32 = arith.constant 0 : i32
    %c0_i32_0 = arith.constant 0 : i32
    return %c0_i32, %arg0 : i32, i32
  }
}

</mosaic_0001>

<bundles_post_ra>
// kernel: fcnet_forward_fm.1
= control target key start
LH: loop header
LB: loop body
LE: loop exit
PB: predicated region body
PF: predicated region fallthrough
CT: control target
= control target key end

     0   :  { %8 = vsyncpa [#allocation3], 0  ;;  %s4379_s0 = inlined_call_operand.hbm [shape: f32[2,2048], index: 0, kind: input, shape index: {}]   ;;  %s4380_s1 = inlined_call_operand.vmem [shape: f32[9,24,24], index: 1, kind: input, shape index: {}]   ;;  %s4381_s2 = inlined_call_operand.vmem [shape: f32[9,24,1], index: 2, kind: input, shape index: {}]   ;;  %s4382_s3 = inlined_call_operand.hbm [shape: f32[1,2048], index: 3, kind: output, shape index: {}]  }
   0x1   :  { %10 = vsyncpa [#allocation3 + $0x1], 0 }
   0x2   :  { %11 = vsyncpa [#allocation4], 0 }
   0x3   :  { %13 = vsyncpa [#allocation4 + $0x1], 0  ;;  %s3442_s12 = smov 0   ;;  %s3444_s13 = smov 0  }
   0x4   :  { %s3446_s14 = smov 0   ;;  %s3448_s15 = smov 0  }
   0x5 LB: > { %s3463_s16 = sadd.s32 4294967295, %s3419_s15   ;;  %s2623_s17 = sadd.s32 4294967294, %s3419_s15   ;;  %s3419_s15 = sphi %s3448_s15, %s4392_s15   ;;  %s3415_s14 = sphi %s3446_s14, %s4391_s14   ;;  %s3411_s13 = sphi %s3444_s13, %s4390_s13   ;;  %s3407_s12 = sphi %s3442_s12, %s4389_s12  }
   0x6   : > { %s3467_s18 = sadd.s32 1, %s3419_s15   ;;  %s26_s19 = sadd.s32 1, %s3415_s14 }
   0x7   : > { %s23_s20 = ssub.s32 %s3419_s15, %s3467_s18  ;;  %p33_p0 = scmp.ne.s32.totalorder %s3415_s14, %s3411_s13 }
   0x8   : > { %p24_p1 = scmp.eq.s32.totalorder %s23_s20, 0  ;;  %p34_p2 = scmp.eq.s32.totalorder %s3419_s15, 0 }
   0x9   : > { %p39_p3 = scmp.ne.s32.totalorder %s3411_s13, %s3407_s12  ;;  %p40_p4 = scmp.eq.s32.totalorder %s3463_s16, 0 }
   0xa   : > { %s3479_s21 = scalar_select %p24_p1, %s3415_s14, %s26_s19  }
   0xb   : > { %p3481_p5 = por %p34_p2, %p33_p0  ;;  %p3485_p6 = por %p40_p4, %p39_p3 }
   0xc   : > { %p105_p7 = scmp.eq.s32.totalorder %s3463_s16, 1  ;;  %p111_p8 = scmp.eq.s32.totalorder %s2623_s17, 1 }
   0xd   : > { %p2901_p10 = scmp.lt.s32.totalorder %s3419_s15, 2  ;;  %s137_s26 = sand.u32 1, %s3415_s14  }
   0xe   : > { %p3492_p11 = por %p105_p7, %p33_p0  ;;  %p3496_p12 = por %p111_p8, %p39_p3 }
   0xf   : > { %s2888_s27 = sshll.u32 %s3419_s15, 4  ;;  %s2626_s28 = sshll.u32 %s137_s26, 4 }
  0x10   : > { %s146_s4 = scalar_lea.hbm %s4379_s0, %s2888_s27  ;;  %s141_s6 = scalar_lea.vmem [#allocation2], %s2626_s28 }
  0x11   : > { %s148_s5 = sshll.u32 %s146_s4, 4  ;;  %s150_s7 = sshll.u32 %s141_s6, 4  ;;  %s149_s5 = int_to_ptr.hbm [resolvable:$true] %s148_s5  ;;  %s151_s7 = int_to_ptr.vmem [resolvable:$true] %s150_s7 }
  0x12   : > { %p3507_p13 = pnand %p2901_p10, %p3481_p5  ;;  %p2629_p0 = scmp.ge.s32.totalorder %s3419_s15, 1 }
  0x13   : > { %p155_p1 = scmp.lt.s32.totalorder %s3419_s15, 3  ;;  %s138_s9 = scalar_lea.sflag [#allocation3], %s137_s26 }
  0x14   : > { %s3323_s10 = sshra.s32 %s149_s5, 4  ;;  %p3327_p3 = pneg %p3507_p13  ;;  %s3324_s10 = int_to_ptr.hbm [resolvable:$true] %s3323_s10 }
  0x15   : > { %s3325_s11 = scalar_lea.hbm %s3324_s10, 16  ;;  %s3330_s20 = scalar_lea.hbm %s4379_s0, 32 }
  0x16   : > { %p3326_p2 = scmp.ne.s32.totalorder %s3324_s10, %s3325_s11  ;;  %p3331_p5 = scmp.lt.s32.totalorder %s3324_s10, %s4379_s0 }
  0x17   : > { %p3332_p8 = scmp.lt.s32.totalorder %s3330_s20, %s3325_s11 }
  0x18   : > { %p3328_p4 = pnand %p3327_p3, %p3326_p2 }
  0x19   : > { %p3333_p10 = por %p3332_p8, %p3331_p5 }
  0x1a   : > { %p3329_p7 = pneg %p3328_p4 }
  0x1c   : > { %p3334_p9 = pnand %p3333_p10, %p3329_p7 }
  0x1e   : > { %3337 = shalt.err (!%p3334_p9)
}
  0x1f   : > { %2896 = dma.hbm_to_vmem [thread:$0]  (!%p3507_p13), %s149_s5, 256, %s151_s7, %s138_s9  }
  0x20   : > { %p156_p2 = pnand %p2629_p0, %p155_p1 }
  0x21   : > { %s3528_s26 = sand.u32 (!%p156_p2), 1, %s3411_s13  }
  0x22   : > { %159 = sbr.rel (%p156_p2) target bundleno = 1520 (0x5f0), region = 32  ;;  %s2630_s28 = sshll.u32 (!%p156_p2), %s3528_s26, 4 }
  0x23   : > { %s162_s29 = scalar_lea.sflag (!%p156_p2), [#allocation3], %s3528_s26  ;;  %s165_s30 = scalar_lea.vmem (!%p156_p2), [#allocation2], %s2630_s28 }
  0x27   : > { %3398 = dma.done.wait (%p3485_p6), %s162_s29, 256  }
  0x28   : > { %3400 = vsyncadd (%p3485_p6), %s162_s29, 4294967040  ;;  %v3421_v0 = vmov 0   ;;  %v198_v1 = vld [vmem:[%s4381_s2 + $0x10] sm:$0xff]  ;;  %v196_v2 = vld [vmem:[%s4381_s2] sm:$0xff]  ;;  %vm237_vm0 = vcmask 1041408   ;;  %vm227_vm1 = vcmask 15360  }
  0x29   : > { %2937 = vset.pattern.permute.xlu1 %v3421_v0  ;;  %2936 = vset.pattern.permute.xlu0 %v3421_v0  ;;  %v191_v3 = vld [vmem:[%s165_s30] sm:$0xff]  ;;  %v192_v4 = vld [vmem:[%s165_s30 + $0x8] sm:$0xff]  ;;  %vm509_vm2 = vcmask 195584   ;;  %s2631_s29 = sshll.u32 %s3528_s26, 3  ;;  %s2885_s30 = sshll.u32 %s3463_s16, 3  ;;  %vm2524_vm3 = vcmask 1042434  }
  0x2a   : > { %2938 = vset.pattern.permute.xlu2 %v3421_v0  ;;  %211 = vperm.xlu0 %2936, %v198_v1   ;;  %216 = vst [vmem:[#allocation1] ss:$4 sm:$0xff] %v191_v3  ;;  %v197_v5 = vld [vmem:[%s4381_s2 + $0x8] sm:$0xff]  ;;  %v193_v7 = vld [vmem:[%s4380_s1] sm:$0xff]  ;;  %v2698_v17 = vld [vmem:[%s4381_s2 + $0x38] sm:$0xff]  ;;  %s2548_s6 = scalar_lea.hbm %s4382_s3, %s2885_s30  ;;  %vm2522_vm4 = vcmask 1040384  }
  0x2b   : > { %201 = vperm.xlu1 %2937, %v196_v2   ;;  %218 = vst [vmem:[#allocation1 + $0x20] ss:$4 sm:$0xff] %v192_v4  ;;  %v2669_v6 = vld [vmem:[%s4381_s2 + $0x28] sm:$0xff]  ;;  %v2699_v16 = vld [vmem:[%s4381_s2 + $0x40] sm:$0xff]  ;;  %v2729_v19 = vld [vmem:[%s4381_s2 + $0x58] sm:$0xff]  ;;  %vm2527_vm5 = vcmask 1044484  }
  0x2c   : > { %v194_v18 = vld [vmem:[%s4380_s1 + $0x8] sm:$0xff]  ;;  %v2728_v20 = vld [vmem:[%s4381_s2 + $0x50] sm:$0xff]  ;;  %v2788_v25 = vld [vmem:[%s4381_s2 + $0x80] sm:$0xff]  ;;  %vm2529_vm6 = vcmask 1046534   ;;  %vm2531_vm7 = vcmask 1045508   ;;  %s188_s16 = scalar_lea.vmem [#allocation5], %s2631_s29 }
  0x2d   : > { %v195_v21 = vld [vmem:[%s4380_s1 + $0x10] sm:$0xff]  ;;  %v2758_v23 = vld [vmem:[%s4381_s2 + $0x68] sm:$0xff]  ;;  %v2819_v26 = vld [vmem:[%s4381_s2 + $0xa0] sm:$0xff]  ;;  %s2550_s7 = sshll.u32 %s188_s16, 4  ;;  %s2552_s23 = sshll.u32 %s2548_s6, 4  ;;  %vm2533_vm8 = vcmask 1043456   ;;  %s2551_s7 = int_to_ptr.vmem [resolvable:$true] %s2550_s7  ;;  %s2553_s23 = int_to_ptr.hbm [resolvable:$true] %s2552_s23 }
  0x2e   : > { %v2759_v22 = vld [vmem:[%s4381_s2 + $0x70] sm:$0xff]  ;;  %v2789_v24 = vld [vmem:[%s4381_s2 + $0x88] sm:$0xff]  ;;  %v2818_v27 = vld [vmem:[%s4381_s2 + $0x98] sm:$0xff]  ;;  %s2538_s8 = scalar_lea.sflag [#allocation4], %s3528_s26  ;;  %s3367_s9 = sshra.s32 %s2553_s23, 4  ;;  %s3368_s9 = int_to_ptr.hbm [resolvable:$true] %s3367_s9 }
  0x2f   : > { %v2849_v28 = vld [vmem:[%s4381_s2 + $0xb8] sm:$0xff]  ;;  %v2848_v29 = vld [vmem:[%s4381_s2 + $0xb0] sm:$0xff]  ;;  %v2875_v30 = vld [vmem:[%s4381_s2 + $0xc0] sm:$0xff]  ;;  %s3369_s10 = scalar_lea.hbm %s3368_s9, 8  ;;  %s3373_s19 = scalar_lea.hbm %s4382_s3, 16 }
  0x30   : > { %v2668_v33 = vld [vmem:[%s4381_s2 + $0x20] sm:$0xff]  ;;  %v2667_v39 = vld [vmem:[%s4381_s2 + $0x18] sm:$0xff]  ;;  %v2697_v52 = vld [vmem:[%s4381_s2 + $0x30] sm:$0xff]  ;;  %p3370_p6 = scmp.ne.s32.totalorder %s3368_s9, %s3369_s10  ;;  %p3374_p0 = scmp.lt.s32.totalorder %s3368_s9, %s4382_s3 }
  0x31   : > { %v219_v8 = vld.sshfl [vmem:[#allocation1] sm:$0xff pattern:$0x73625140]  ;;  %v220_v9 = vld.sshfl [vmem:[#allocation1 + $0x8] sm:$0xff pattern:$0x73625140]  ;;  %501 = vperm.xlu2 %2938, %v2668_v33   ;;  %p3375_p1 = scmp.lt.s32.totalorder %s3373_s19, %s3369_s10 }
  0x32   : > { %206 = vperm.xlu0 %2936, %v197_v5   ;;  %2632 = vmatpush.msk.msra.mxu0 %vm237_vm0, %v219_v8  ;;  %v221_v10 = vld.sshfl [vmem:[#allocation1 + $0x10] sm:$0xff pattern:$0x73625140]  ;;  %v222_v11 = vld.sshfl [vmem:[#allocation1 + $0x18] sm:$0xff pattern:$0x73625140]  ;;  %p3371_p9 = pnand %p3370_p6, %p3492_p11 }
  0x33   : > { %506 = vperm.xlu1 %2937, %v2669_v6   ;;  %2636 = vmatpush.msk.msra.mxu1 %vm237_vm0, %v220_v9  ;;  %v225_v12 = vld.sshfl [vmem:[#allocation1 + $0x30] sm:$0xff pattern:$0x73625140]  ;;  %v226_v13 = vld.sshfl [vmem:[#allocation1 + $0x38] sm:$0xff pattern:$0x73625140]  ;;  %p3376_p3 = por %p3375_p1, %p3374_p0 }
  0x34   : > { %2640 = vmatpush.msk.msra.mxu2 %vm237_vm0, %v221_v10  ;;  %2644 = vmatpush.msk.msra.mxu3 %vm237_vm0, %v222_v11  ;;  %v223_v14 = vld.sshfl [vmem:[#allocation1 + $0x20] sm:$0xff pattern:$0x73625140]  ;;  %v224_v15 = vld.sshfl [vmem:[#allocation1 + $0x28] sm:$0xff pattern:$0x73625140]  ;;  %p3372_p13 = pneg %p3371_p9 }
  0x35   : > { %2633 = vmatmul.msk.f32.vlgmr.msra.gmra.mxu0 %vm227_vm1, %v193_v7  ;;  %2637 = vmatmul.msk.f32.vlgmr.msra.gmra.mxu1 %vm227_vm1, %v193_v7  ;;  %v2727_v1 = vld [vmem:[%s4381_s2 + $0x48] sm:$0xff]  ;;  %v3661_v6 = vld [vmem:[%s4380_s1 + $0x18] sm:$0xff] }
  0x36   : > { %2641 = vmatmul.msk.f32.vlgmr.msra.gmra.mxu2 %vm227_vm1, %v193_v7  ;;  %2645 = vmatmul.msk.f32.vlgmr.msra.gmra.mxu3 %vm227_vm1, %v193_v7  ;;  %p3377_p4 = pnand %p3376_p3, %p3372_p13 }
  0x37   : > { %2656 = vmatpush.msk.msrb.mxu2 %vm237_vm0, %v225_v12  ;;  %2660 = vmatpush.msk.msrb.mxu3 %vm237_vm0, %v226_v13  ;;  %v2757_v13 = vld [vmem:[%s4381_s2 + $0x60] sm:$0xff] }
  0x38   : > { %2648 = vmatpush.msk.msrb.mxu0 %vm237_vm0, %v223_v14  ;;  %2652 = vmatpush.msk.msrb.mxu1 %vm237_vm0, %v224_v15 }
  0x39   : > { %496 = vperm.xlu2 %2938, %v2667_v39  }
  0x3a   : > { %771 = vperm.xlu0 %2936, %v2699_v16  }
  0x3b   : > { %766 = vperm.xlu1 %2937, %v2698_v17  }
  0x3d   : > { %2634 = vmatmul.msk.f32.gmra.mxu0 %vm227_vm1, %v194_v18  ;;  %2638 = vmatmul.msk.f32.gmra.mxu1 %vm227_vm1, %v194_v18 }
  0x3e   : > { %2642 = vmatmul.msk.f32.gmra.mxu2 %vm227_vm1, %v194_v18  ;;  %2646 = vmatmul.msk.f32.gmra.mxu3 %vm227_vm1, %v194_v18 }
  0x41   : > { %761 = vperm.xlu2 %2938, %v2697_v52  }
  0x42   : > { %1035 = vperm.xlu0 %2936, %v2729_v19  }
  0x43   : > { %1030 = vperm.xlu1 %2937, %v2728_v20  }
  0x45   : > { %2635 = vmatmul.msk.f32.gmra.mxu0 %vm227_vm1, %v195_v21  ;;  %2639 = vmatmul.msk.f32.gmra.mxu1 %vm227_vm1, %v195_v21 }
  0x46   : > { %2643 = vmatmul.msk.f32.gmra.mxu2 %vm227_vm1, %v195_v21  ;;  %2647 = vmatmul.msk.f32.gmra.mxu3 %vm227_vm1, %v195_v21 }
  0x49   : > { %1025 = vperm.xlu2 %2938, %v2727_v1  }
  0x4a   : > { %1299 = vperm.xlu0 %2936, %v2759_v22  }
  0x4b   : > { %1294 = vperm.xlu1 %2937, %v2758_v23  }
  0x4d   : > { %2649 = vmatmul.msk.f32.vlgmr.msrb.gmra.mxu0 %vm227_vm1, %v193_v7  ;;  %2653 = vmatmul.msk.f32.vlgmr.msrb.gmra.mxu1 %vm227_vm1, %v193_v7 }
  0x4e   : > { %2657 = vmatmul.msk.f32.vlgmr.msrb.gmra.mxu2 %vm227_vm1, %v193_v7  ;;  %2661 = vmatmul.msk.f32.vlgmr.msrb.gmra.mxu3 %vm227_vm1, %v193_v7 }
  0x51   : > { %1289 = vperm.xlu2 %2938, %v2757_v13  }
  0x52   : > { %1563 = vperm.xlu0 %2936, %v2789_v24  }
  0x53   : > { %1558 = vperm.xlu1 %2937, %v2788_v25   ;;  %v2787_v25 = vld [vmem:[%s4381_s2 + $0x78] sm:$0xff] }
  0x55   : > { %2650 = vmatmul.msk.f32.gmra.mxu0 %vm227_vm1, %v194_v18  ;;  %2654 = vmatmul.msk.f32.gmra.mxu1 %vm227_vm1, %v194_v18 }
  0x56   : > { %2658 = vmatmul.msk.f32.gmra.mxu2 %vm227_vm1, %v194_v18  ;;  %2662 = vmatmul.msk.f32.gmra.mxu3 %vm227_vm1, %v194_v18  ;;  %v3673_v18 = vld [vmem:[%s4380_s1 + $0x20] sm:$0xff] }
  0x59   : > { %1553 = vperm.xlu2 %2938, %v2787_v25  }
  0x5a   : > { %1827 = vperm.xlu0 %2936, %v2819_v26  }
  0x5b   : > { %1822 = vperm.xlu1 %2937, %v2818_v27  }
  0x5d   : > { %2651 = vmatmul.msk.f32.gmra.mxu0 %vm227_vm1, %v195_v21  ;;  %2655 = vmatmul.msk.f32.gmra.mxu1 %vm227_vm1, %v195_v21 }
  0x5e   : > { %2659 = vmatmul.msk.f32.gmra.mxu2 %vm227_vm1, %v195_v21  ;;  %2663 = vmatmul.msk.f32.gmra.mxu3 %vm227_vm1, %v195_v21 }
  0x62   : > { %2091 = vperm.xlu0 %2936, %v2849_v28  }
  0x63   : > { %2086 = vperm.xlu1 %2937, %v2848_v29  }
  0x6a   : > { %2341 = vperm.xlu0 %2936, %v2875_v30   ;;  %v3695_v30 = vld [vmem:[%s4380_s1 + $0x28] sm:$0xff] }
  0x9c   : > { %v3631_v34 = vpop.permute.xlu0 %211 }
  0x9d   : > { %v3636_v40 = vpop.permute.xlu1 %201 }
  0xa4   : > { %v3640_v47 = vpop.permute.xlu0 %206 }
  0xb2   : > { %v271_v31 = vpop.f32.mrf.mxu0  ;;  %v297_v32 = vpop.f32.mrf.mxu1 }
  0xb3   : > { %v272_v41 = vadd.f32 %v271_v31, %v3636_v40  ;;  %v298_v42 = vadd.f32 %v297_v32, %v3636_v40 }
  0xb5   : > { %2939 = vtanh.f32 %v272_v41 }
  0xb6   : > { %2941 = vtanh.f32 %v298_v42 }
  0xb9   : > { %v323_v35 = vpop.f32.mrf.mxu2  ;;  %v349_v36 = vpop.f32.mrf.mxu3 }
  0xba   : > { %v274_v37 = vpop.f32.mrf.mxu0  ;;  %v300_v38 = vpop.f32.mrf.mxu1  ;;  %v324_v0 = vadd.f32 %v323_v35, %v3636_v40  ;;  %v350_v3 = vadd.f32 %v349_v36, %v3636_v40 }
  0xbb   : > { %v275_v50 = vadd.f32 %v274_v37, %v3640_v47  ;;  %v301_v51 = vadd.f32 %v300_v38, %v3640_v47  ;;  %v2940_v55 = vpop.eup %2939  ;;  %v2817_v38 = vld [vmem:[%s4381_s2 + $0x90] sm:$0xff] }
  0xbc   : > { %v2942_v61 = vpop.eup %2941  ;;  %1817 = vperm.xlu2 %2938, %v2817_v38  }
  0xc1   : > { %v326_v43 = vpop.f32.mrf.mxu2  ;;  %v352_v44 = vpop.f32.mrf.mxu3 }
  0xc2   : > { %v277_v45 = vpop.f32.mrf.mxu0  ;;  %v303_v46 = vpop.f32.mrf.mxu1  ;;  %v327_v56 = vadd.f32 %v326_v43, %v3640_v47  ;;  %v353_v62 = vadd.f32 %v352_v44, %v3640_v47 }
  0xc3   : > { %v278_v48 = vadd.f32 %v277_v45, %v3631_v34  ;;  %v304_v49 = vadd.f32 %v303_v46, %v3631_v34 }
  0xc5   : > { %2943 = vtanh.f32 %v278_v48  ;;  %v2847_v48 = vld [vmem:[%s4381_s2 + $0xa8] sm:$0xff] }
  0xc6   : > { %2945 = vtanh.f32 %v304_v49  ;;  %2081 = vperm.xlu2 %2938, %v2847_v48  }
  0xc7   : > { %2947 = vtanh.f32 %v275_v50 }
  0xc8   : > { %2949 = vtanh.f32 %v301_v51 }
  0xc9   : > { %v329_v53 = vpop.f32.mrf.mxu2  ;;  %v355_v54 = vpop.f32.mrf.mxu3 }
  0xca   : > { %v330_v57 = vadd.f32 %v329_v53, %v3631_v34  ;;  %v356_v58 = vadd.f32 %v355_v54, %v3631_v34  ;;  %v375_v59 = vpop.f32.mrf.mxu0  ;;  %v401_v60 = vpop.f32.mrf.mxu1 }
  0xcb   : > { %v2944_v63 = vpop.eup %2943  ;;  %v376_v28 = vadd.f32 %v375_v59, %v3636_v40  ;;  %v402_v29 = vadd.f32 %v401_v60, %v3636_v40 }
  0xcc   : > { %2951 = vtanh.f32 %v330_v57  ;;  %v2946_v2 = vpop.eup %2945  ;;  %532 = vmatpush.msra.mxu0 %v2944_v63 }
  0xcd   : > { %2953 = vtanh.f32 %v356_v58  ;;  %v2948_v4 = vpop.eup %2947  ;;  %558 = vmatpush.msra.mxu1 %v2946_v2 }
  0xce   : > { %2955 = vtanh.f32 %v327_v56  ;;  %v2950_v5 = vpop.eup %2949  ;;  %533 = vmatpush.msra.mxu0 %v2948_v4 }
  0xcf   : > { %2957 = vtanh.f32 %v353_v62  ;;  %559 = vmatpush.msra.mxu1 %v2950_v5  ;;  %v3749_v62 = vpop.permute.xlu1 %506 }
  0xd0   : > { %2959 = vtanh.f32 %v324_v0  ;;  %534 = vmatpush.msra.mxu0 %v2940_v55  ;;  %v3745_v55 = vpop.permute.xlu2 %501 }
  0xd1   : > { %2961 = vtanh.f32 %v350_v3  ;;  %v427_v7 = vpop.f32.mrf.mxu2  ;;  %v453_v8 = vpop.f32.mrf.mxu3  ;;  %560 = vmatpush.msra.mxu1 %v2942_v61  ;;  %2670 = vmatmul.msk.f32.vlgmr.msra.gmra.mxu0 %vm509_vm2, %v3661_v6 }
  0xd2   : > { %v2952_v9 = vpop.eup %2951  ;;  %v378_v10 = vpop.f32.mrf.mxu0  ;;  %2673 = vmatmul.msk.f32.vlgmr.msra.gmra.mxu1 %vm509_vm2, %v3661_v6  ;;  %v428_v41 = vadd.f32 %v427_v7, %v3636_v40 }
  0xd3   : > { %v404_v11 = vpop.f32.mrf.mxu1  ;;  %v2954_v12 = vpop.eup %2953  ;;  %584 = vmatpush.msra.mxu2 %v2952_v9  ;;  %v379_v26 = vadd.f32 %v378_v10, %v3640_v47 }
  0xd4   : > { %v2956_v14 = vpop.eup %2955  ;;  %610 = vmatpush.msra.mxu3 %v2954_v12  ;;  %v405_v27 = vadd.f32 %v404_v11, %v3640_v47 }
  0xd5   : > { %v2958_v15 = vpop.eup %2957  ;;  %585 = vmatpush.msra.mxu2 %v2956_v14 }
  0xd6   : > { %v2960_v16 = vpop.eup %2959  ;;  %611 = vmatpush.msra.mxu3 %v2958_v15 }
  0xd7   : > { %v2962_v17 = vpop.eup %2961  ;;  %586 = vmatpush.msra.mxu2 %v2960_v16 }
  0xd8   : > { %612 = vmatpush.msra.mxu3 %v2962_v17  ;;  %2676 = vmatmul.msk.f32.vlgmr.msra.gmra.mxu2 %vm509_vm2, %v3661_v6  ;;  %v3751_v63 = vpop.permute.xlu2 %496  ;;  %v3760_v17 = vld [vmem:[%s4380_s1 + $0x30] sm:$0xff] }
  0xd9   : > { %2679 = vmatmul.msk.f32.vlgmr.msra.gmra.mxu3 %vm509_vm2, %v3661_v6  ;;  %v430_v19 = vpop.f32.mrf.mxu2  ;;  %v456_v20 = vpop.f32.mrf.mxu3  ;;  %2671 = vmatmul.msk.f32.gmra.mxu0 %vm509_vm2, %v3673_v18 }
  0xda   : > { %v381_v21 = vpop.f32.mrf.mxu0  ;;  %2674 = vmatmul.msk.f32.gmra.mxu1 %vm509_vm2, %v3673_v18  ;;  %v431_v33 = vadd.f32 %v430_v19, %v3640_v47  ;;  %v457_v37 = vadd.f32 %v456_v20, %v3640_v47 }
  0xdb   : > { %v407_v22 = vpop.f32.mrf.mxu1  ;;  %v382_v23 = vadd.f32 %v381_v21, %v3631_v34 }
  0xdc   : > { %v408_v24 = vadd.f32 %v407_v22, %v3631_v34 }
  0xdd   : > { %2963 = vtanh.f32 %v382_v23 }
  0xde   : > { %2965 = vtanh.f32 %v408_v24 }
  0xdf   : > { %2967 = vtanh.f32 %v379_v26 }
  0xe0   : > { %2677 = vmatmul.msk.f32.gmra.mxu2 %vm509_vm2, %v3673_v18  ;;  %2969 = vtanh.f32 %v405_v27 }
  0xe1   : > { %2680 = vmatmul.msk.f32.gmra.mxu3 %vm509_vm2, %v3673_v18  ;;  %v433_v31 = vpop.f32.mrf.mxu2  ;;  %v459_v32 = vpop.f32.mrf.mxu3  ;;  %2971 = vtanh.f32 %v376_v28  ;;  %2672 = vmatmul.msk.f32.gmra.mxu0 %vm509_vm2, %v3695_v30  ;;  %v3775_v28 = vld [vmem:[%s4380_s1 + $0x38] sm:$0xff] }
  0xe2   : > { %v434_v35 = vadd.f32 %v433_v31, %v3631_v34  ;;  %v460_v36 = vadd.f32 %v459_v32, %v3631_v34  ;;  %2973 = vtanh.f32 %v402_v29  ;;  %2675 = vmatmul.msk.f32.gmra.mxu1 %vm509_vm2, %v3695_v30  ;;  %v454_v34 = vadd.f32 %v453_v8, %v3636_v40 }
  0xe3   : > { %v2964_v39 = vpop.eup %2963 }
  0xe4   : > { %2975 = vtanh.f32 %v434_v35  ;;  %v2966_v42 = vpop.eup %2965  ;;  %636 = vmatpush.msrb.mxu0 %v2964_v39 }
  0xe5   : > { %2977 = vtanh.f32 %v460_v36  ;;  %v2968_v43 = vpop.eup %2967  ;;  %662 = vmatpush.msrb.mxu1 %v2966_v42 }
  0xe6   : > { %2979 = vtanh.f32 %v431_v33  ;;  %v2970_v44 = vpop.eup %2969  ;;  %637 = vmatpush.msrb.mxu0 %v2968_v43 }
  0xe7   : > { %2981 = vtanh.f32 %v457_v37  ;;  %v2972_v45 = vpop.eup %2971  ;;  %663 = vmatpush.msrb.mxu1 %v2970_v44 }
  0xe8   : > { %2983 = vtanh.f32 %v428_v41  ;;  %2678 = vmatmul.msk.f32.gmra.mxu2 %vm509_vm2, %v3695_v30  ;;  %v2974_v46 = vpop.eup %2973  ;;  %638 = vmatpush.msrb.mxu0 %v2972_v45 }
  0xe9   : > { %2985 = vtanh.f32 %v454_v34  ;;  %2681 = vmatmul.msk.f32.gmra.mxu3 %vm509_vm2, %v3695_v30  ;;  %664 = vmatpush.msrb.mxu1 %v2974_v46  ;;  %v2696_v46 = vld [vmem:[%s4380_s1 + $0x40] sm:$0xff] }
  0xea   : > { %v2976_v40 = vpop.eup %2975  ;;  %2682 = vmatmul.msk.f32.vlgmr.msrb.gmra.mxu0 %vm509_vm2, %v3661_v6  ;;  %2685 = vmatmul.msk.f32.vlgmr.msrb.gmra.mxu1 %vm509_vm2, %v3661_v6 }
  0xeb   : > { %v2978_v47 = vpop.eup %2977  ;;  %688 = vmatpush.msrb.mxu2 %v2976_v40 }
  0xec   : > { %v2980_v49 = vpop.eup %2979  ;;  %714 = vmatpush.msrb.mxu3 %v2978_v47 }
  0xed   : > { %v2982_v50 = vpop.eup %2981  ;;  %689 = vmatpush.msrb.mxu2 %v2980_v49 }
  0xee   : > { %v2984_v51 = vpop.eup %2983  ;;  %715 = vmatpush.msrb.mxu3 %v2982_v50 }
  0xef   : > { %v2986_v52 = vpop.eup %2985  ;;  %690 = vmatpush.msrb.mxu2 %v2984_v51 }
  0xf0   : > { %716 = vmatpush.msrb.mxu3 %v2986_v52  ;;  %2688 = vmatmul.msk.f32.vlgmr.msrb.gmra.mxu2 %vm509_vm2, %v3661_v6 }
  0xf1   : > { %2691 = vmatmul.msk.f32.vlgmr.msrb.gmra.mxu3 %vm509_vm2, %v3661_v6 }
  0xf2   : > { %2683 = vmatmul.msk.f32.gmra.mxu0 %vm509_vm2, %v3673_v18  ;;  %2686 = vmatmul.msk.f32.gmra.mxu1 %vm509_vm2, %v3673_v18 }
  0xf8   : > { %2689 = vmatmul.msk.f32.gmra.mxu2 %vm509_vm2, %v3673_v18 }
  0xf9   : > { %2692 = vmatmul.msk.f32.gmra.mxu3 %vm509_vm2, %v3673_v18 }
  0xfa   : > { %2684 = vmatmul.msk.f32.gmra.mxu0 %vm509_vm2, %v3695_v30  ;;  %2687 = vmatmul.msk.f32.gmra.mxu1 %vm509_vm2, %v3695_v30 }
 0x100   : > { %2690 = vmatmul.msk.f32.gmra.mxu2 %vm509_vm2, %v3695_v30 }
 0x101   : > { %2693 = vmatmul.msk.f32.gmra.mxu3 %vm509_vm2, %v3695_v30 }
 0x14e   : > { %v536_v53 = vpop.f32.mrf.mxu0 }
 0x14f   : > { %v562_v54 = vpop.f32.mrf.mxu1  ;;  %v537_v1 = vadd.f32 %v536_v53, %v3751_v63 }
 0x150   : > { %v563_v4 = vadd.f32 %v562_v54, %v3751_v63 }
 0x156   : > { %v539_v56 = vpop.f32.mrf.mxu0 }
 0x157   : > { %v565_v57 = vpop.f32.mrf.mxu1  ;;  %v540_v59 = vadd.f32 %v539_v56, %v3745_v55 }
 0x158   : > { %v566_v61 = vadd.f32 %v565_v57, %v3745_v55 }
 0x159   : > { %2987 = vtanh.f32 %v540_v59 }
 0x15a   : > { %2989 = vtanh.f32 %v566_v61 }
 0x15b   : > { %v588_v58 = vpop.f32.mrf.mxu2 }
 0x15c   : > { %v614_v60 = vpop.f32.mrf.mxu3  ;;  %v589_v23 = vadd.f32 %v588_v58, %v3751_v63 }
 0x15d   : > { %v615_v24 = vadd.f32 %v614_v60, %v3751_v63 }
 0x15e   : > { %v542_v0 = vpop.f32.mrf.mxu0 }
 0x15f   : > { %v543_v2 = vadd.f32 %v542_v0, %v3749_v62  ;;  %v568_v3 = vpop.f32.mrf.mxu1  ;;  %v2988_v8 = vpop.eup %2987 }
 0x160   : > { %v569_v5 = vadd.f32 %v568_v3, %v3749_v62  ;;  %v2990_v9 = vpop.eup %2989 }
 0x161   : > { %2991 = vtanh.f32 %v543_v2 }
 0x162   : > { %2993 = vtanh.f32 %v569_v5 }
 0x163   : > { %v591_v6 = vpop.f32.mrf.mxu2  ;;  %2995 = vtanh.f32 %v537_v1 }
 0x164   : > { %v617_v7 = vpop.f32.mrf.mxu3  ;;  %2997 = vtanh.f32 %v563_v4  ;;  %v592_v18 = vadd.f32 %v591_v6, %v3745_v55 }
 0x165   : > { %v618_v21 = vadd.f32 %v617_v7, %v3745_v55  ;;  %v3828_v7 = vpop.permute.xlu0 %771 }
 0x167   : > { %v640_v10 = vpop.f32.mrf.mxu0  ;;  %v2992_v11 = vpop.eup %2991 }
 0x168   : > { %v666_v12 = vpop.f32.mrf.mxu1  ;;  %v2994_v13 = vpop.eup %2993  ;;  %796 = vmatpush.msra.mxu0 %v2992_v11  ;;  %v641_v43 = vadd.f32 %v640_v10, %v3751_v63 }
 0x169   : > { %v2996_v14 = vpop.eup %2995  ;;  %822 = vmatpush.msra.mxu1 %v2994_v13  ;;  %v667_v44 = vadd.f32 %v666_v12, %v3751_v63  ;;  %v3834_v13 = vpop.permute.xlu2 %761 }
 0x16a   : > { %v2998_v15 = vpop.eup %2997  ;;  %797 = vmatpush.msra.mxu0 %v2988_v8  ;;  %v3830_v8 = vpop.permute.xlu1 %766 }
 0x16b   : > { %v594_v16 = vpop.f32.mrf.mxu2  ;;  %823 = vmatpush.msra.mxu1 %v2990_v9 }
 0x16c   : > { %v595_v19 = vadd.f32 %v594_v16, %v3749_v62  ;;  %v620_v20 = vpop.f32.mrf.mxu3  ;;  %798 = vmatpush.msra.mxu0 %v2996_v14 }
 0x16d   : > { %v621_v22 = vadd.f32 %v620_v20, %v3749_v62  ;;  %824 = vmatpush.msra.mxu1 %v2998_v15  ;;  %2700 = vmatmul.msk.f32.vlgmr.msra.gmra.mxu0 %vm509_vm2, %v3760_v17 }
 0x16e   : > { %2999 = vtanh.f32 %v595_v19  ;;  %2703 = vmatmul.msk.f32.vlgmr.msra.gmra.mxu1 %vm509_vm2, %v3760_v17 }
 0x16f   : > { %3001 = vtanh.f32 %v621_v22  ;;  %v643_v25 = vpop.f32.mrf.mxu0 }
 0x170   : > { %3003 = vtanh.f32 %v592_v18  ;;  %v669_v26 = vpop.f32.mrf.mxu1  ;;  %v644_v37 = vadd.f32 %v643_v25, %v3745_v55 }
 0x171   : > { %3005 = vtanh.f32 %v618_v21  ;;  %v670_v42 = vadd.f32 %v669_v26, %v3745_v55 }
 0x172   : > { %3007 = vtanh.f32 %v589_v23 }
 0x173   : > { %3009 = vtanh.f32 %v615_v24  ;;  %v692_v27 = vpop.f32.mrf.mxu2 }
 0x174   : > { %v3000_v29 = vpop.eup %2999  ;;  %v718_v30 = vpop.f32.mrf.mxu3  ;;  %v693_v60 = vadd.f32 %v692_v27, %v3751_v63 }
 0x175   : > { %v3002_v31 = vpop.eup %3001  ;;  %848 = vmatpush.msra.mxu2 %v3000_v29  ;;  %2701 = vmatmul.msk.f32.gmra.mxu0 %vm509_vm2, %v3775_v28  ;;  %v719_v61 = vadd.f32 %v718_v30, %v3751_v63 }
 0x176   : > { %v3004_v32 = vpop.eup %3003  ;;  %874 = vmatpush.msra.mxu3 %v3002_v31  ;;  %2704 = vmatmul.msk.f32.gmra.mxu1 %vm509_vm2, %v3775_v28 }
 0x177   : > { %v3006_v33 = vpop.eup %3005  ;;  %v646_v35 = vpop.f32.mrf.mxu0  ;;  %849 = vmatpush.msra.mxu2 %v3004_v32 }
 0x178   : > { %v3008_v36 = vpop.eup %3007  ;;  %v647_v38 = vadd.f32 %v646_v35, %v3749_v62  ;;  %v672_v39 = vpop.f32.mrf.mxu1  ;;  %875 = vmatpush.msra.mxu3 %v3006_v33 }
 0x179   : > { %v3010_v41 = vpop.eup %3009  ;;  %v673_v34 = vadd.f32 %v672_v39, %v3749_v62  ;;  %850 = vmatpush.msra.mxu2 %v3008_v36 }
 0x17a   : > { %3011 = vtanh.f32 %v647_v38  ;;  %876 = vmatpush.msra.mxu3 %v3010_v41  ;;  %2706 = vmatmul.msk.f32.vlgmr.msra.gmra.mxu2 %vm509_vm2, %v3760_v17  ;;  %v3856_v41 = vld [vmem:[%s4380_s1 + $0x50] sm:$0xff] }
 0x17b   : > { %3013 = vtanh.f32 %v673_v34  ;;  %2709 = vmatmul.msk.f32.vlgmr.msra.gmra.mxu3 %vm509_vm2, %v3760_v17  ;;  %v695_v45 = vpop.f32.mrf.mxu2 }
 0x17c   : > { %3015 = vtanh.f32 %v644_v37  ;;  %v721_v40 = vpop.f32.mrf.mxu3  ;;  %v696_v53 = vadd.f32 %v695_v45, %v3745_v55 }
 0x17d   : > { %3017 = vtanh.f32 %v670_v42  ;;  %2702 = vmatmul.msk.f32.gmra.mxu0 %vm509_vm2, %v2696_v46  ;;  %v722_v58 = vadd.f32 %v721_v40, %v3745_v55 }
 0x17e   : > { %3019 = vtanh.f32 %v641_v43  ;;  %2705 = vmatmul.msk.f32.gmra.mxu1 %vm509_vm2, %v2696_v46 }
 0x17f   : > { %3021 = vtanh.f32 %v667_v44 }
 0x180   : > { %v3012_v47 = vpop.eup %3011 }
 0x181   : > { %v3014_v48 = vpop.eup %3013  ;;  %900 = vmatpush.msrb.mxu0 %v3012_v47 }
 0x182   : > { %v3016_v49 = vpop.eup %3015  ;;  %926 = vmatpush.msrb.mxu1 %v3014_v48  ;;  %2707 = vmatmul.msk.f32.gmra.mxu2 %vm509_vm2, %v3775_v28 }
 0x183   : > { %v3018_v50 = vpop.eup %3017  ;;  %2710 = vmatmul.msk.f32.gmra.mxu3 %vm509_vm2, %v3775_v28  ;;  %v698_v51 = vpop.f32.mrf.mxu2  ;;  %901 = vmatpush.msrb.mxu0 %v3016_v49 }
 0x184   : > { %v3020_v52 = vpop.eup %3019  ;;  %v699_v54 = vadd.f32 %v698_v51, %v3749_v62  ;;  %v724_v56 = vpop.f32.mrf.mxu3  ;;  %927 = vmatpush.msrb.mxu1 %v3018_v50 }
 0x185   : > { %v3022_v57 = vpop.eup %3021  ;;  %v725_v59 = vadd.f32 %v724_v56, %v3749_v62  ;;  %902 = vmatpush.msrb.mxu0 %v3020_v52 }
 0x186   : > { %3023 = vtanh.f32 %v699_v54  ;;  %928 = vmatpush.msrb.mxu1 %v3022_v57  ;;  %2712 = vmatmul.msk.f32.vlgmr.msrb.gmra.mxu0 %vm509_vm2, %v3760_v17  ;;  %v3873_v54 = vld [vmem:[%s4380_s1 + $0x58] sm:$0xff] }
 0x187   : > { %3025 = vtanh.f32 %v725_v59  ;;  %2715 = vmatmul.msk.f32.vlgmr.msrb.gmra.mxu1 %vm509_vm2, %v3760_v17 }
 0x188   : > { %3027 = vtanh.f32 %v696_v53 }
 0x189   : > { %3029 = vtanh.f32 %v722_v58 }
 0x18a   : > { %3031 = vtanh.f32 %v693_v60  ;;  %2708 = vmatmul.msk.f32.gmra.mxu2 %vm509_vm2, %v2696_v46 }
 0x18b   : > { %3033 = vtanh.f32 %v719_v61  ;;  %2711 = vmatmul.msk.f32.gmra.mxu3 %vm509_vm2, %v2696_v46 }
 0x18c   : > { %v3024_v55 = vpop.eup %3023 }
 0x18d   : > { %v3026_v62 = vpop.eup %3025  ;;  %952 = vmatpush.msrb.mxu2 %v3024_v55 }
 0x18e   : > { %v3028_v0 = vpop.eup %3027  ;;  %978 = vmatpush.msrb.mxu3 %v3026_v62  ;;  %2713 = vmatmul.msk.f32.gmra.mxu0 %vm509_vm2, %v3775_v28 }
 0x18f   : > { %v3030_v63 = vpop.eup %3029  ;;  %2716 = vmatmul.msk.f32.gmra.mxu1 %vm509_vm2, %v3775_v28  ;;  %953 = vmatpush.msrb.mxu2 %v3028_v0 }
 0x190   : > { %v3032_v1 = vpop.eup %3031  ;;  %979 = vmatpush.msrb.mxu3 %v3030_v63 }
 0x191   : > { %v3034_v2 = vpop.eup %3033  ;;  %954 = vmatpush.msrb.mxu2 %v3032_v1 }
 0x192   : > { %980 = vmatpush.msrb.mxu3 %v3034_v2  ;;  %2718 = vmatmul.msk.f32.vlgmr.msrb.gmra.mxu2 %vm509_vm2, %v3760_v17 }
 0x193   : > { %2721 = vmatmul.msk.f32.vlgmr.msrb.gmra.mxu3 %vm509_vm2, %v3760_v17 }
 0x196   : > { %2714 = vmatmul.msk.f32.gmra.mxu0 %vm509_vm2, %v2696_v46 }
 0x197   : > { %2717 = vmatmul.msk.f32.gmra.mxu1 %vm509_vm2, %v2696_v46 }
 0x19a   : > { %2719 = vmatmul.msk.f32.gmra.mxu2 %vm509_vm2, %v3775_v28 }
 0x19b   : > { %2722 = vmatmul.msk.f32.gmra.mxu3 %vm509_vm2, %v3775_v28  ;;  %v3843_v28 = vld [vmem:[%s4380_s1 + $0x48] sm:$0xff] }
 0x1a2   : > { %2720 = vmatmul.msk.f32.gmra.mxu2 %vm509_vm2, %v2696_v46 }
 0x1a3   : > { %2723 = vmatmul.msk.f32.gmra.mxu3 %vm509_vm2, %v2696_v46 }
 0x1ea   : > { %v800_v3 = vpop.f32.mrf.mxu0 }
 0x1eb   : > { %v826_v4 = vpop.f32.mrf.mxu1  ;;  %v801_v17 = vadd.f32 %v800_v3, %v3834_v13 }
 0x1ec   : > { %v827_v19 = vadd.f32 %v826_v4, %v3834_v13 }
 0x1f2   : > { %v803_v5 = vpop.f32.mrf.mxu0 }
 0x1f3   : > { %v829_v6 = vpop.f32.mrf.mxu1  ;;  %v804_v10 = vadd.f32 %v803_v5, %v3830_v8 }
 0x1f4   : > { %v830_v14 = vadd.f32 %v829_v6, %v3830_v8 }
 0x1fa   : > { %v806_v9 = vpop.f32.mrf.mxu0 }
 0x1fb   : > { %v807_v11 = vadd.f32 %v806_v9, %v3828_v7  ;;  %v832_v12 = vpop.f32.mrf.mxu1 }
 0x1fc   : > { %v833_v15 = vadd.f32 %v832_v12, %v3828_v7 }
 0x1fd   : > { %v852_v16 = vpop.f32.mrf.mxu2  ;;  %3035 = vtanh.f32 %v807_v11 }
 0x1fe   : > { %v878_v18 = vpop.f32.mrf.mxu3  ;;  %3037 = vtanh.f32 %v833_v15  ;;  %v853_v42 = vadd.f32 %v852_v16, %v3834_v13 }
 0x1ff   : > { %3039 = vtanh.f32 %v804_v10  ;;  %v879_v34 = vadd.f32 %v878_v18, %v3834_v13 }
 0x200   : > { %3041 = vtanh.f32 %v830_v14 }
 0x201   : > { %3043 = vtanh.f32 %v801_v17 }
 0x202   : > { %3045 = vtanh.f32 %v827_v19 }
 0x203   : > { %v904_v20 = vpop.f32.mrf.mxu0  ;;  %v3036_v21 = vpop.eup %3035 }
 0x204   : > { %v930_v22 = vpop.f32.mrf.mxu1  ;;  %v3038_v23 = vpop.eup %3037  ;;  %1060 = vmatpush.msra.mxu0 %v3036_v21  ;;  %v905_v50 = vadd.f32 %v904_v20, %v3834_v13 }
 0x205   : > { %v855_v24 = vpop.f32.mrf.mxu2  ;;  %v3040_v25 = vpop.eup %3039  ;;  %1086 = vmatpush.msra.mxu1 %v3038_v23  ;;  %v931_v53 = vadd.f32 %v930_v22, %v3834_v13 }
 0x206   : > { %v881_v26 = vpop.f32.mrf.mxu3  ;;  %v3042_v27 = vpop.eup %3041  ;;  %1061 = vmatpush.msra.mxu0 %v3040_v25  ;;  %v856_v35 = vadd.f32 %v855_v24, %v3830_v8 }
 0x207   : > { %v3044_v29 = vpop.eup %3043  ;;  %1087 = vmatpush.msra.mxu1 %v3042_v27  ;;  %v882_v38 = vadd.f32 %v881_v26, %v3830_v8  ;;  %v3921_v21 = vpop.permute.xlu0 %1035 }
 0x208   : > { %v3046_v30 = vpop.eup %3045  ;;  %1062 = vmatpush.msra.mxu0 %v3044_v29  ;;  %v3923_v22 = vpop.permute.xlu1 %1030 }
 0x209   : > { %1088 = vmatpush.msra.mxu1 %v3046_v30  ;;  %2730 = vmatmul.msk.f32.vlgmr.msra.gmra.mxu0 %vm509_vm2, %v3843_v28  ;;  %v3927_v27 = vpop.permute.xlu2 %1025 }
 0x20a   : > { %2733 = vmatmul.msk.f32.vlgmr.msra.gmra.mxu1 %vm509_vm2, %v3843_v28 }
 0x20b   : > { %v907_v31 = vpop.f32.mrf.mxu0 }
 0x20c   : > { %v933_v32 = vpop.f32.mrf.mxu1  ;;  %v908_v44 = vadd.f32 %v907_v31, %v3830_v8 }
 0x20d   : > { %v858_v33 = vpop.f32.mrf.mxu2  ;;  %v934_v40 = vadd.f32 %v933_v32, %v3830_v8 }
 0x20e   : > { %v859_v36 = vadd.f32 %v858_v33, %v3828_v7  ;;  %v884_v37 = vpop.f32.mrf.mxu3 }
 0x20f   : > { %v885_v39 = vadd.f32 %v884_v37, %v3828_v7 }
 0x210   : > { %3047 = vtanh.f32 %v859_v36 }
 0x211   : > { %3049 = vtanh.f32 %v885_v39  ;;  %2731 = vmatmul.msk.f32.gmra.mxu0 %vm509_vm2, %v3856_v41 }
 0x212   : > { %3051 = vtanh.f32 %v856_v35  ;;  %2734 = vmatmul.msk.f32.gmra.mxu1 %vm509_vm2, %v3856_v41 }
 0x213   : > { %3053 = vtanh.f32 %v882_v38  ;;  %v910_v43 = vpop.f32.mrf.mxu0 }
 0x214   : > { %3055 = vtanh.f32 %v853_v42  ;;  %v911_v45 = vadd.f32 %v910_v43, %v3828_v7  ;;  %v936_v46 = vpop.f32.mrf.mxu1  ;;  %v3936_v42 = vld [vmem:[%s4380_s1 + $0x60] sm:$0xff] }
 0x215   : > { %3057 = vtanh.f32 %v879_v34  ;;  %v937_v47 = vadd.f32 %v936_v46, %v3828_v7  ;;  %v956_v48 = vpop.f32.mrf.mxu2 }
 0x216   : > { %v3048_v49 = vpop.eup %3047  ;;  %3059 = vtanh.f32 %v911_v45  ;;  %v982_v51 = vpop.f32.mrf.mxu3  ;;  %v957_v11 = vadd.f32 %v956_v48, %v3834_v13 }
 0x217   : > { %v3050_v52 = vpop.eup %3049  ;;  %3061 = vtanh.f32 %v937_v47  ;;  %1112 = vmatpush.msra.mxu2 %v3048_v49  ;;  %v983_v12 = vadd.f32 %v982_v51, %v3834_v13  ;;  %v3947_v49 = vld [vmem:[%s4380_s1 + $0x68] sm:$0xff] }
 0x218   : > { %v3052_v56 = vpop.eup %3051  ;;  %3063 = vtanh.f32 %v908_v44  ;;  %1138 = vmatpush.msra.mxu3 %v3050_v52 }
 0x219   : > { %v3054_v57 = vpop.eup %3053  ;;  %3065 = vtanh.f32 %v934_v40  ;;  %1113 = vmatpush.msra.mxu2 %v3052_v56  ;;  %2732 = vmatmul.msk.f32.gmra.mxu0 %vm509_vm2, %v3873_v54 }
 0x21a   : > { %v3056_v58 = vpop.eup %3055  ;;  %3067 = vtanh.f32 %v905_v50  ;;  %1139 = vmatpush.msra.mxu3 %v3054_v57  ;;  %2735 = vmatmul.msk.f32.gmra.mxu1 %vm509_vm2, %v3873_v54 }
 0x21b   : > { %v3058_v59 = vpop.eup %3057  ;;  %3069 = vtanh.f32 %v931_v53  ;;  %1114 = vmatpush.msra.mxu2 %v3056_v58 }
 0x21c   : > { %v3060_v60 = vpop.eup %3059  ;;  %1140 = vmatpush.msra.mxu3 %v3058_v59  ;;  %2736 = vmatmul.msk.f32.vlgmr.msra.gmra.mxu2 %vm509_vm2, %v3843_v28 }
 0x21d   : > { %v3062_v61 = vpop.eup %3061  ;;  %2739 = vmatmul.msk.f32.vlgmr.msra.gmra.mxu3 %vm509_vm2, %v3843_v28  ;;  %v959_v55 = vpop.f32.mrf.mxu2  ;;  %1164 = vmatpush.msrb.mxu0 %v3060_v60 }
 0x21e   : > { %v3064_v62 = vpop.eup %3063  ;;  %v985_v0 = vpop.f32.mrf.mxu3  ;;  %1190 = vmatpush.msrb.mxu1 %v3062_v61  ;;  %v960_v4 = vadd.f32 %v959_v55, %v3830_v8 }
 0x21f   : > { %v3066_v63 = vpop.eup %3065  ;;  %1165 = vmatpush.msrb.mxu0 %v3064_v62  ;;  %v986_v9 = vadd.f32 %v985_v0, %v3830_v8  ;;  %v3964_v62 = vld [vmem:[%s4380_s1 + $0x70] sm:$0xff] }
 0x220   : > { %v3068_v1 = vpop.eup %3067  ;;  %1191 = vmatpush.msrb.mxu1 %v3066_v63 }
 0x221   : > { %v3070_v2 = vpop.eup %3069  ;;  %1166 = vmatpush.msrb.mxu0 %v3068_v1 }
 0x222   : > { %1192 = vmatpush.msrb.mxu1 %v3070_v2  ;;  %2742 = vmatmul.msk.f32.vlgmr.msrb.gmra.mxu0 %vm509_vm2, %v3843_v28 }
 0x223   : > { %2745 = vmatmul.msk.f32.vlgmr.msrb.gmra.mxu1 %vm509_vm2, %v3843_v28 }
 0x224   : > { %2737 = vmatmul.msk.f32.gmra.mxu2 %vm509_vm2, %v3856_v41 }
 0x225   : > { %2740 = vmatmul.msk.f32.gmra.mxu3 %vm509_vm2, %v3856_v41  ;;  %v962_v3 = vpop.f32.mrf.mxu2 }
 0x226   : > { %v963_v5 = vadd.f32 %v962_v3, %v3828_v7  ;;  %v988_v6 = vpop.f32.mrf.mxu3 }
 0x227   : > { %v989_v10 = vadd.f32 %v988_v6, %v3828_v7 }
 0x228   : > { %3071 = vtanh.f32 %v963_v5 }
 0x229   : > { %3073 = vtanh.f32 %v989_v10 }
 0x22a   : > { %3075 = vtanh.f32 %v960_v4  ;;  %2743 = vmatmul.msk.f32.gmra.mxu0 %vm509_vm2, %v3856_v41 }
 0x22b   : > { %3077 = vtanh.f32 %v986_v9  ;;  %2746 = vmatmul.msk.f32.gmra.mxu1 %vm509_vm2, %v3856_v41 }
 0x22c   : > { %3079 = vtanh.f32 %v957_v11  ;;  %2738 = vmatmul.msk.f32.gmra.mxu2 %vm509_vm2, %v3873_v54 }
 0x22d   : > { %3081 = vtanh.f32 %v983_v12  ;;  %2741 = vmatmul.msk.f32.gmra.mxu3 %vm509_vm2, %v3873_v54 }
 0x22e   : > { %v3072_v7 = vpop.eup %3071 }
 0x22f   : > { %v3074_v8 = vpop.eup %3073  ;;  %1216 = vmatpush.msrb.mxu2 %v3072_v7 }
 0x230   : > { %v3076_v13 = vpop.eup %3075  ;;  %1242 = vmatpush.msrb.mxu3 %v3074_v8 }
 0x231   : > { %v3078_v14 = vpop.eup %3077  ;;  %1217 = vmatpush.msrb.mxu2 %v3076_v13 }
 0x232   : > { %v3080_v15 = vpop.eup %3079  ;;  %1243 = vmatpush.msrb.mxu3 %v3078_v14  ;;  %2744 = vmatmul.msk.f32.gmra.mxu0 %vm509_vm2, %v3873_v54 }
 0x233   : > { %v3082_v16 = vpop.eup %3081  ;;  %2747 = vmatmul.msk.f32.gmra.mxu1 %vm509_vm2, %v3873_v54  ;;  %1218 = vmatpush.msrb.mxu2 %v3080_v15 }
 0x234   : > { %1244 = vmatpush.msrb.mxu3 %v3082_v16  ;;  %2748 = vmatmul.msk.f32.vlgmr.msrb.gmra.mxu2 %vm509_vm2, %v3843_v28 }
 0x235   : > { %2751 = vmatmul.msk.f32.vlgmr.msrb.gmra.mxu3 %vm509_vm2, %v3843_v28 }
 0x23c   : > { %2749 = vmatmul.msk.f32.gmra.mxu2 %vm509_vm2, %v3856_v41 }
 0x23d   : > { %2752 = vmatmul.msk.f32.gmra.mxu3 %vm509_vm2, %v3856_v41 }
 0x244   : > { %2750 = vmatmul.msk.f32.gmra.mxu2 %vm509_vm2, %v3873_v54 }
 0x245   : > { %2753 = vmatmul.msk.f32.gmra.mxu3 %vm509_vm2, %v3873_v54 }
 0x286   : > { %v1064_v17 = vpop.f32.mrf.mxu0 }
 0x287   : > { %v1090_v18 = vpop.f32.mrf.mxu1  ;;  %v1065_v30 = vadd.f32 %v1064_v17, %v3927_v27 }
 0x288   : > { %v1091_v31 = vadd.f32 %v1090_v18, %v3927_v27 }
 0x28e   : > { %v1067_v19 = vpop.f32.mrf.mxu0 }
 0x28f   : > { %v1093_v20 = vpop.f32.mrf.mxu1  ;;  %v1068_v24 = vadd.f32 %v1067_v19, %v3923_v22 }
 0x290   : > { %v1094_v28 = vadd.f32 %v1093_v20, %v3923_v22 }
 0x296   : > { %v1070_v23 = vpop.f32.mrf.mxu0 }
 0x297   : > { %v1071_v25 = vadd.f32 %v1070_v23, %v3921_v21  ;;  %v1096_v26 = vpop.f32.mrf.mxu1 }
 0x298   : > { %v1097_v29 = vadd.f32 %v1096_v26, %v3921_v21 }
 0x299   : > { %3083 = vtanh.f32 %v1071_v25 }
 0x29a   : > { %3085 = vtanh.f32 %v1097_v29 }
 0x29b   : > { %3087 = vtanh.f32 %v1068_v24 }
 0x29c   : > { %3089 = vtanh.f32 %v1094_v28 }
 0x29d   : > { %3091 = vtanh.f32 %v1065_v30 }
 0x29e   : > { %3093 = vtanh.f32 %v1091_v31 }
 0x29f   : > { %v1116_v32 = vpop.f32.mrf.mxu2  ;;  %v1168_v33 = vpop.f32.mrf.mxu0 }
 0x2a0   : > { %v3084_v35 = vpop.eup %3083  ;;  %v1142_v36 = vpop.f32.mrf.mxu3  ;;  %v1117_v47 = vadd.f32 %v1116_v32, %v3927_v27  ;;  %v1169_v63 = vadd.f32 %v1168_v33, %v3927_v27 }
 0x2a1   : > { %v1194_v37 = vpop.f32.mrf.mxu1  ;;  %v3086_v38 = vpop.eup %3085  ;;  %1324 = vmatpush.msra.mxu0 %v3084_v35  ;;  %v1143_v48 = vadd.f32 %v1142_v36, %v3927_v27 }
 0x2a2   : > { %v3088_v39 = vpop.eup %3087  ;;  %1350 = vmatpush.msra.mxu1 %v3086_v38  ;;  %3095 = vtanh.f32 %v1117_v47  ;;  %v1195_v2 = vadd.f32 %v1194_v37, %v3927_v27  ;;  %v4014_v36 = vpop.permute.xlu0 %1299 }
 0x2a3   : > { %v3090_v41 = vpop.eup %3089  ;;  %1325 = vmatpush.msra.mxu0 %v3088_v39  ;;  %3097 = vtanh.f32 %v1143_v48  ;;  %v4016_v37 = vpop.permute.xlu1 %1294 }
 0x2a4   : > { %v3092_v34 = vpop.eup %3091  ;;  %1351 = vmatpush.msra.mxu1 %v3090_v41 }
 0x2a5   : > { %v3094_v43 = vpop.eup %3093  ;;  %1326 = vmatpush.msra.mxu0 %v3092_v34  ;;  %v4020_v34 = vpop.permute.xlu2 %1289 }
 0x2a6   : > { %1352 = vmatpush.msra.mxu1 %v3094_v43  ;;  %2760 = vmatmul.msk.f32.vlgmr.msra.gmra.mxu0 %vm509_vm2, %v3936_v42 }
 0x2a7   : > { %2763 = vmatmul.msk.f32.vlgmr.msra.gmra.mxu1 %vm509_vm2, %v3936_v42  ;;  %v1119_v44 = vpop.f32.mrf.mxu2  ;;  %v1171_v45 = vpop.f32.mrf.mxu0 }
 0x2a8   : > { %v1145_v46 = vpop.f32.mrf.mxu3  ;;  %v1120_v50 = vadd.f32 %v1119_v44, %v3923_v22  ;;  %v1172_v61 = vadd.f32 %v1171_v45, %v3923_v22  ;;  %v3096_v0 = vpop.eup %3095 }
 0x2a9   : > { %v1197_v40 = vpop.f32.mrf.mxu1  ;;  %v1146_v51 = vadd.f32 %v1145_v46, %v3923_v22  ;;  %v3098_v1 = vpop.eup %3097 }
 0x2aa   : > { %3099 = vtanh.f32 %v1120_v50  ;;  %v1198_v55 = vadd.f32 %v1197_v40, %v3923_v22 }
 0x2ab   : > { %3101 = vtanh.f32 %v1146_v51 }
 0x2ae   : > { %2761 = vmatmul.msk.f32.gmra.mxu0 %vm509_vm2, %v3947_v49 }
 0x2af   : > { %2764 = vmatmul.msk.f32.gmra.mxu1 %vm509_vm2, %v3947_v49  ;;  %v1122_v52 = vpop.f32.mrf.mxu2  ;;  %v1174_v53 = vpop.f32.mrf.mxu0 }
 0x2b0   : > { %v1123_v54 = vadd.f32 %v1122_v52, %v3921_v21  ;;  %v1148_v56 = vpop.f32.mrf.mxu3  ;;  %v1175_v57 = vadd.f32 %v1174_v53, %v3921_v21  ;;  %v3100_v3 = vpop.eup %3099  ;;  %v4029_v52 = vld [vmem:[%s4380_s1 + $0x78] sm:$0xff] }
 0x2b1   : > { %v1200_v58 = vpop.f32.mrf.mxu1  ;;  %v1149_v59 = vadd.f32 %v1148_v56, %v3921_v21  ;;  %v3102_v4 = vpop.eup %3101 }
 0x2b2   : > { %v1201_v60 = vadd.f32 %v1200_v58, %v3921_v21  ;;  %3103 = vtanh.f32 %v1123_v54 }
 0x2b3   : > { %3105 = vtanh.f32 %v1149_v59 }
 0x2b4   : > { %3107 = vtanh.f32 %v1175_v57 }
 0x2b5   : > { %3109 = vtanh.f32 %v1201_v60  ;;  %v4038_v60 = vld [vmem:[%s4380_s1 + $0x80] sm:$0xff] }
 0x2b6   : > { %3111 = vtanh.f32 %v1172_v61  ;;  %2762 = vmatmul.msk.f32.gmra.mxu0 %vm509_vm2, %v3964_v62 }
 0x2b7   : > { %3113 = vtanh.f32 %v1198_v55  ;;  %2765 = vmatmul.msk.f32.gmra.mxu1 %vm509_vm2, %v3964_v62  ;;  %v1220_v5 = vpop.f32.mrf.mxu2 }
 0x2b8   : > { %v3104_v6 = vpop.eup %3103  ;;  %3115 = vtanh.f32 %v1169_v63  ;;  %v1246_v9 = vpop.f32.mrf.mxu3  ;;  %v1221_v25 = vadd.f32 %v1220_v5, %v3927_v27  ;;  %v4052_v5 = vld [vmem:[%s4380_s1 + $0x88] sm:$0xff] }
 0x2b9   : > { %v3106_v10 = vpop.eup %3105  ;;  %3117 = vtanh.f32 %v1195_v2  ;;  %1376 = vmatpush.msra.mxu2 %v3104_v6  ;;  %v1247_v26 = vadd.f32 %v1246_v9, %v3927_v27 }
 0x2ba   : > { %v3108_v11 = vpop.eup %3107  ;;  %1402 = vmatpush.msra.mxu3 %v3106_v10 }
 0x2bb   : > { %v3110_v12 = vpop.eup %3109  ;;  %1428 = vmatpush.msrb.mxu0 %v3108_v11  ;;  %1377 = vmatpush.msra.mxu2 %v3100_v3 }
 0x2bc   : > { %v3112_v7 = vpop.eup %3111  ;;  %1454 = vmatpush.msrb.mxu1 %v3110_v12  ;;  %1403 = vmatpush.msra.mxu3 %v3102_v4 }
 0x2bd   : > { %v3114_v8 = vpop.eup %3113  ;;  %1429 = vmatpush.msrb.mxu0 %v3112_v7  ;;  %1378 = vmatpush.msra.mxu2 %v3096_v0 }
 0x2be   : > { %v3116_v13 = vpop.eup %3115  ;;  %1455 = vmatpush.msrb.mxu1 %v3114_v8  ;;  %1404 = vmatpush.msra.mxu3 %v3098_v1 }
 0x2bf   : > { %v3118_v14 = vpop.eup %3117  ;;  %1430 = vmatpush.msrb.mxu0 %v3116_v13  ;;  %2766 = vmatmul.msk.f32.vlgmr.msra.gmra.mxu2 %vm509_vm2, %v3936_v42  ;;  %v1223_v15 = vpop.f32.mrf.mxu2 }
 0x2c0   : > { %1456 = vmatpush.msrb.mxu1 %v3118_v14  ;;  %2769 = vmatmul.msk.f32.vlgmr.msra.gmra.mxu3 %vm509_vm2, %v3936_v42  ;;  %v1249_v16 = vpop.f32.mrf.mxu3  ;;  %v1224_v18 = vadd.f32 %v1223_v15, %v3923_v22 }
 0x2c1   : > { %2772 = vmatmul.msk.f32.vlgmr.msrb.gmra.mxu0 %vm509_vm2, %v3936_v42  ;;  %2775 = vmatmul.msk.f32.vlgmr.msrb.gmra.mxu1 %vm509_vm2, %v3936_v42  ;;  %v1250_v23 = vadd.f32 %v1249_v16, %v3923_v22 }
 0x2c7   : > { %2767 = vmatmul.msk.f32.gmra.mxu2 %vm509_vm2, %v3947_v49  ;;  %v1226_v17 = vpop.f32.mrf.mxu2 }
 0x2c8   : > { %2770 = vmatmul.msk.f32.gmra.mxu3 %vm509_vm2, %v3947_v49  ;;  %v1227_v19 = vadd.f32 %v1226_v17, %v3921_v21  ;;  %v1252_v20 = vpop.f32.mrf.mxu3 }
 0x2c9   : > { %2773 = vmatmul.msk.f32.gmra.mxu0 %vm509_vm2, %v3947_v49  ;;  %2776 = vmatmul.msk.f32.gmra.mxu1 %vm509_vm2, %v3947_v49  ;;  %v1253_v24 = vadd.f32 %v1252_v20, %v3921_v21 }
 0x2ca   : > { %3119 = vtanh.f32 %v1227_v19 }
 0x2cb   : > { %3121 = vtanh.f32 %v1253_v24 }
 0x2cc   : > { %3123 = vtanh.f32 %v1224_v18 }
 0x2cd   : > { %3125 = vtanh.f32 %v1250_v23 }
 0x2ce   : > { %3127 = vtanh.f32 %v1221_v25 }
 0x2cf   : > { %3129 = vtanh.f32 %v1247_v26  ;;  %2768 = vmatmul.msk.f32.gmra.mxu2 %vm509_vm2, %v3964_v62 }
 0x2d0   : > { %v3120_v22 = vpop.eup %3119  ;;  %2771 = vmatmul.msk.f32.gmra.mxu3 %vm509_vm2, %v3964_v62 }
 0x2d1   : > { %v3122_v28 = vpop.eup %3121  ;;  %2774 = vmatmul.msk.f32.gmra.mxu0 %vm509_vm2, %v3964_v62  ;;  %2777 = vmatmul.msk.f32.gmra.mxu1 %vm509_vm2, %v3964_v62 }
 0x2d2   : > { %v3124_v21 = vpop.eup %3123  ;;  %1480 = vmatpush.msrb.mxu2 %v3120_v22  ;;  %1506 = vmatpush.msrb.mxu3 %v3122_v28 }
 0x2d3   : > { %v3126_v27 = vpop.eup %3125 }
 0x2d4   : > { %v3128_v29 = vpop.eup %3127  ;;  %1481 = vmatpush.msrb.mxu2 %v3124_v21  ;;  %1507 = vmatpush.msrb.mxu3 %v3126_v27 }
 0x2d5   : > { %v3130_v30 = vpop.eup %3129 }
 0x2d6   : > { %1482 = vmatpush.msrb.mxu2 %v3128_v29  ;;  %1508 = vmatpush.msrb.mxu3 %v3130_v30 }
 0x2d7   : > { %2778 = vmatmul.msk.f32.vlgmr.msrb.gmra.mxu2 %vm509_vm2, %v3936_v42 }
 0x2d8   : > { %2781 = vmatmul.msk.f32.vlgmr.msrb.gmra.mxu3 %vm509_vm2, %v3936_v42 }
 0x2df   : > { %2779 = vmatmul.msk.f32.gmra.mxu2 %vm509_vm2, %v3947_v49 }
 0x2e0   : > { %2782 = vmatmul.msk.f32.gmra.mxu3 %vm509_vm2, %v3947_v49 }
 0x2e7   : > { %2780 = vmatmul.msk.f32.gmra.mxu2 %vm509_vm2, %v3964_v62 }
 0x2e8   : > { %2783 = vmatmul.msk.f32.gmra.mxu3 %vm509_vm2, %v3964_v62 }
 0x323   : > { %v1328_v31 = vpop.f32.mrf.mxu0 }
 0x324   : > { %v1354_v32 = vpop.f32.mrf.mxu1  ;;  %v1329_v45 = vadd.f32 %v1328_v31, %v4020_v34 }
 0x325   : > { %v1355_v46 = vadd.f32 %v1354_v32, %v4020_v34 }
 0x32b   : > { %v1331_v33 = vpop.f32.mrf.mxu0 }
 0x32c   : > { %v1357_v35 = vpop.f32.mrf.mxu1  ;;  %v1332_v39 = vadd.f32 %v1331_v33, %v4016_v37 }
 0x32d   : > { %v1358_v43 = vadd.f32 %v1357_v35, %v4016_v37 }
 0x333   : > { %v1334_v38 = vpop.f32.mrf.mxu0 }
 0x334   : > { %v1335_v41 = vadd.f32 %v1334_v38, %v4014_v36  ;;  %v1360_v42 = vpop.f32.mrf.mxu1 }
 0x335   : > { %v1361_v44 = vadd.f32 %v1360_v42, %v4014_v36 }
 0x336   : > { %3131 = vtanh.f32 %v1335_v41 }
 0x337   : > { %3133 = vtanh.f32 %v1361_v44 }
 0x338   : > { %3135 = vtanh.f32 %v1332_v39 }
 0x339   : > { %3137 = vtanh.f32 %v1358_v43 }
 0x33a   : > { %3139 = vtanh.f32 %v1329_v45 }
 0x33b   : > { %3141 = vtanh.f32 %v1355_v46 }
 0x33c   : > { %v3132_v40 = vpop.eup %3131 }
 0x33d   : > { %v3134_v47 = vpop.eup %3133  ;;  %1588 = vmatpush.msra.mxu0 %v3132_v40 }
 0x33e   : > { %v3136_v48 = vpop.eup %3135  ;;  %v1432_v49 = vpop.f32.mrf.mxu0  ;;  %1614 = vmatpush.msra.mxu1 %v3134_v47 }
 0x33f   : > { %v1458_v50 = vpop.f32.mrf.mxu1  ;;  %v3138_v51 = vpop.eup %3137  ;;  %1589 = vmatpush.msra.mxu0 %v3136_v48  ;;  %v1433_v55 = vadd.f32 %v1432_v49, %v4020_v34 }
 0x340   : > { %v3140_v53 = vpop.eup %3139  ;;  %1615 = vmatpush.msra.mxu1 %v3138_v51  ;;  %v1459_v0 = vadd.f32 %v1458_v50, %v4020_v34  ;;  %v4107_v49 = vpop.permute.xlu0 %1563 }
 0x341   : > { %v3142_v54 = vpop.eup %3141  ;;  %1590 = vmatpush.msra.mxu0 %v3140_v53  ;;  %3143 = vtanh.f32 %v1433_v55  ;;  %v4109_v50 = vpop.permute.xlu1 %1558 }
 0x342   : > { %v1380_v56 = vpop.f32.mrf.mxu2  ;;  %1616 = vmatpush.msra.mxu1 %v3142_v54  ;;  %2790 = vmatmul.msk.f32.vlgmr.msra.gmra.mxu0 %vm509_vm2, %v4029_v52  ;;  %3145 = vtanh.f32 %v1459_v0 }
 0x343   : > { %v1406_v57 = vpop.f32.mrf.mxu3  ;;  %2793 = vmatmul.msk.f32.vlgmr.msra.gmra.mxu1 %vm509_vm2, %v4029_v52  ;;  %v1381_v15 = vadd.f32 %v1380_v56, %v4020_v34  ;;  %v4113_v56 = vpop.permute.xlu2 %1553 }
 0x344   : > { %v1407_v17 = vadd.f32 %v1406_v57, %v4020_v34 }
 0x346   : > { %v1435_v58 = vpop.f32.mrf.mxu0 }
 0x347   : > { %v1461_v59 = vpop.f32.mrf.mxu1  ;;  %v1436_v2 = vadd.f32 %v1435_v58, %v4016_v37  ;;  %v3144_v8 = vpop.eup %3143 }
 0x348   : > { %v1462_v6 = vadd.f32 %v1461_v59, %v4016_v37  ;;  %v3146_v14 = vpop.eup %3145 }
 0x34a   : > { %v1383_v61 = vpop.f32.mrf.mxu2  ;;  %2791 = vmatmul.msk.f32.gmra.mxu0 %vm509_vm2, %v4038_v60 }
 0x34b   : > { %v1409_v62 = vpop.f32.mrf.mxu3  ;;  %2794 = vmatmul.msk.f32.gmra.mxu1 %vm509_vm2, %v4038_v60  ;;  %v1384_v12 = vadd.f32 %v1383_v61, %v4016_v37 }
 0x34c   : > { %v1410_v13 = vadd.f32 %v1409_v62, %v4016_v37 }
 0x34e   : > { %v1438_v63 = vpop.f32.mrf.mxu0 }
 0x34f   : > { %v1464_v1 = vpop.f32.mrf.mxu1  ;;  %v1439_v3 = vadd.f32 %v1438_v63, %v4014_v36 }
 0x350   : > { %v1465_v4 = vadd.f32 %v1464_v1, %v4014_v36 }
 0x351   : > { %3147 = vtanh.f32 %v1439_v3 }
 0x352   : > { %3149 = vtanh.f32 %v1465_v4  ;;  %v1386_v9 = vpop.f32.mrf.mxu2  ;;  %2792 = vmatmul.msk.f32.gmra.mxu0 %vm509_vm2, %v4052_v5 }
 0x353   : > { %3151 = vtanh.f32 %v1436_v2  ;;  %v1387_v10 = vadd.f32 %v1386_v9, %v4014_v36  ;;  %v1412_v11 = vpop.f32.mrf.mxu3  ;;  %2795 = vmatmul.msk.f32.gmra.mxu1 %vm509_vm2, %v4052_v5  ;;  %v4122_v2 = vld [vmem:[%s4380_s1 + $0x90] sm:$0xff]  ;;  %v4131_v9 = vld [vmem:[%s4380_s1 + $0x98] sm:$0xff] }
 0x354   : > { %3153 = vtanh.f32 %v1462_v6  ;;  %v1413_v7 = vadd.f32 %v1412_v11, %v4014_v36 }
 0x355   : > { %3155 = vtanh.f32 %v1387_v10 }
 0x356   : > { %3157 = vtanh.f32 %v1413_v7 }
 0x357   : > { %v3148_v16 = vpop.eup %3147  ;;  %3159 = vtanh.f32 %v1384_v12 }
 0x358   : > { %v3150_v18 = vpop.eup %3149  ;;  %1692 = vmatpush.msrb.mxu0 %v3148_v16  ;;  %3161 = vtanh.f32 %v1410_v13 }
 0x359   : > { %v3152_v19 = vpop.eup %3151  ;;  %1718 = vmatpush.msrb.mxu1 %v3150_v18  ;;  %3163 = vtanh.f32 %v1381_v15 }
 0x35a   : > { %v3154_v20 = vpop.eup %3153  ;;  %1693 = vmatpush.msrb.mxu0 %v3152_v19  ;;  %v1484_v23 = vpop.f32.mrf.mxu2  ;;  %3165 = vtanh.f32 %v1407_v17 }
 0x35b   : > { %v3156_v24 = vpop.eup %3155  ;;  %1719 = vmatpush.msrb.mxu1 %v3154_v20  ;;  %v1510_v25 = vpop.f32.mrf.mxu3  ;;  %v1485_v41 = vadd.f32 %v1484_v23, %v4020_v34 }
 0x35c   : > { %v3158_v26 = vpop.eup %3157  ;;  %1694 = vmatpush.msrb.mxu0 %v3144_v8  ;;  %1640 = vmatpush.msra.mxu2 %v3156_v24  ;;  %v1511_v42 = vadd.f32 %v1510_v25, %v4020_v34 }
 0x35d   : > { %1720 = vmatpush.msrb.mxu1 %v3146_v14  ;;  %2802 = vmatmul.msk.f32.vlgmr.msrb.gmra.mxu0 %vm509_vm2, %v4029_v52  ;;  %v3160_v22 = vpop.eup %3159  ;;  %v4142_v14 = vld [vmem:[%s4380_s1 + $0xa0] sm:$0xff] }
 0x35e   : > { %2805 = vmatmul.msk.f32.vlgmr.msrb.gmra.mxu1 %vm509_vm2, %v4029_v52  ;;  %1666 = vmatpush.msra.mxu3 %v3158_v26  ;;  %v3162_v28 = vpop.eup %3161 }
 0x35f   : > { %1641 = vmatpush.msra.mxu2 %v3160_v22  ;;  %v3164_v21 = vpop.eup %3163 }
 0x360   : > { %1667 = vmatpush.msra.mxu3 %v3162_v28  ;;  %v3166_v27 = vpop.eup %3165 }
 0x361   : > { %1642 = vmatpush.msra.mxu2 %v3164_v21 }
 0x362   : > { %1668 = vmatpush.msra.mxu3 %v3166_v27  ;;  %2796 = vmatmul.msk.f32.vlgmr.msra.gmra.mxu2 %vm509_vm2, %v4029_v52  ;;  %v1487_v29 = vpop.f32.mrf.mxu2 }
 0x363   : > { %2799 = vmatmul.msk.f32.vlgmr.msra.gmra.mxu3 %vm509_vm2, %v4029_v52  ;;  %v1513_v30 = vpop.f32.mrf.mxu3  ;;  %v1488_v32 = vadd.f32 %v1487_v29, %v4016_v37 }
 0x364   : > { %v1514_v38 = vadd.f32 %v1513_v30, %v4016_v37 }
 0x365   : > { %2803 = vmatmul.msk.f32.gmra.mxu0 %vm509_vm2, %v4038_v60 }
 0x366   : > { %2806 = vmatmul.msk.f32.gmra.mxu1 %vm509_vm2, %v4038_v60 }
 0x36a   : > { %2797 = vmatmul.msk.f32.gmra.mxu2 %vm509_vm2, %v4038_v60  ;;  %v1490_v31 = vpop.f32.mrf.mxu2 }
 0x36b   : > { %2800 = vmatmul.msk.f32.gmra.mxu3 %vm509_vm2, %v4038_v60  ;;  %v1491_v33 = vadd.f32 %v1490_v31, %v4014_v36  ;;  %v1516_v35 = vpop.f32.mrf.mxu3 }
 0x36c   : > { %v1517_v39 = vadd.f32 %v1516_v35, %v4014_v36 }
 0x36d   : > { %3167 = vtanh.f32 %v1491_v33  ;;  %2804 = vmatmul.msk.f32.gmra.mxu0 %vm509_vm2, %v4052_v5 }
 0x36e   : > { %3169 = vtanh.f32 %v1517_v39  ;;  %2807 = vmatmul.msk.f32.gmra.mxu1 %vm509_vm2, %v4052_v5 }
 0x36f   : > { %3171 = vtanh.f32 %v1488_v32 }
 0x370   : > { %3173 = vtanh.f32 %v1514_v38 }
 0x371   : > { %3175 = vtanh.f32 %v1485_v41 }
 0x372   : > { %3177 = vtanh.f32 %v1511_v42  ;;  %2798 = vmatmul.msk.f32.gmra.mxu2 %vm509_vm2, %v4052_v5 }
 0x373   : > { %v3168_v36 = vpop.eup %3167  ;;  %2801 = vmatmul.msk.f32.gmra.mxu3 %vm509_vm2, %v4052_v5 }
 0x374   : > { %v3170_v37 = vpop.eup %3169  ;;  %1744 = vmatpush.msrb.mxu2 %v3168_v36 }
 0x375   : > { %v3172_v43 = vpop.eup %3171  ;;  %1770 = vmatpush.msrb.mxu3 %v3170_v37 }
 0x376   : > { %v3174_v34 = vpop.eup %3173  ;;  %1745 = vmatpush.msrb.mxu2 %v3172_v43 }
 0x377   : > { %v3176_v44 = vpop.eup %3175  ;;  %1771 = vmatpush.msrb.mxu3 %v3174_v34 }
 0x378   : > { %v3178_v45 = vpop.eup %3177  ;;  %1746 = vmatpush.msrb.mxu2 %v3176_v44 }
 0x379   : > { %1772 = vmatpush.msrb.mxu3 %v3178_v45 }
 0x37a   : > { %2808 = vmatmul.msk.f32.vlgmr.msrb.gmra.mxu2 %vm509_vm2, %v4029_v52 }
 0x37b   : > { %2811 = vmatmul.msk.f32.vlgmr.msrb.gmra.mxu3 %vm509_vm2, %v4029_v52 }
 0x382   : > { %2809 = vmatmul.msk.f32.gmra.mxu2 %vm509_vm2, %v4038_v60 }
 0x383   : > { %2812 = vmatmul.msk.f32.gmra.mxu3 %vm509_vm2, %v4038_v60 }
 0x38a   : > { %2810 = vmatmul.msk.f32.gmra.mxu2 %vm509_vm2, %v4052_v5 }
 0x38b   : > { %2813 = vmatmul.msk.f32.gmra.mxu3 %vm509_vm2, %v4052_v5 }
 0x3bf   : > { %v1592_v46 = vpop.f32.mrf.mxu0 }
 0x3c0   : > { %v1618_v40 = vpop.f32.mrf.mxu1  ;;  %v1593_v59 = vadd.f32 %v1592_v46, %v4113_v56 }
 0x3c1   : > { %v1619_v60 = vadd.f32 %v1618_v40, %v4113_v56 }
 0x3c7   : > { %v1595_v47 = vpop.f32.mrf.mxu0 }
 0x3c8   : > { %v1621_v48 = vpop.f32.mrf.mxu1  ;;  %v1596_v52 = vadd.f32 %v1595_v47, %v4109_v50 }
 0x3c9   : > { %v1622_v57 = vadd.f32 %v1621_v48, %v4109_v50 }
 0x3cf   : > { %v1598_v51 = vpop.f32.mrf.mxu0 }
 0x3d0   : > { %v1599_v53 = vadd.f32 %v1598_v51, %v4107_v49  ;;  %v1624_v54 = vpop.f32.mrf.mxu1 }
 0x3d1   : > { %v1625_v58 = vadd.f32 %v1624_v54, %v4107_v49 }
 0x3d2   : > { %3179 = vtanh.f32 %v1599_v53 }
 0x3d3   : > { %3181 = vtanh.f32 %v1625_v58 }
 0x3d4   : > { %3183 = vtanh.f32 %v1596_v52 }
 0x3d5   : > { %3185 = vtanh.f32 %v1622_v57 }
 0x3d6   : > { %3187 = vtanh.f32 %v1593_v59 }
 0x3d7   : > { %3189 = vtanh.f32 %v1619_v60 }
 0x3d8   : > { %v3180_v61 = vpop.eup %3179 }
 0x3d9   : > { %v3182_v55 = vpop.eup %3181  ;;  %1852 = vmatpush.msra.mxu0 %v3180_v61 }
 0x3da   : > { %v3184_v62 = vpop.eup %3183  ;;  %v1696_v0 = vpop.f32.mrf.mxu0  ;;  %1878 = vmatpush.msra.mxu1 %v3182_v55 }
 0x3db   : > { %v3186_v63 = vpop.eup %3185  ;;  %v1722_v1 = vpop.f32.mrf.mxu1  ;;  %1853 = vmatpush.msra.mxu0 %v3184_v62  ;;  %v1697_v17 = vadd.f32 %v1696_v0, %v4113_v56 }
 0x3dc   : > { %v3188_v3 = vpop.eup %3187  ;;  %1879 = vmatpush.msra.mxu1 %v3186_v63  ;;  %v1723_v19 = vadd.f32 %v1722_v1, %v4113_v56  ;;  %v4200_v0 = vpop.permute.xlu0 %1827 }
 0x3dd   : > { %v3190_v4 = vpop.eup %3189  ;;  %1854 = vmatpush.msra.mxu0 %v3188_v3  ;;  %v4202_v63 = vpop.permute.xlu1 %1822 }
 0x3de   : > { %1880 = vmatpush.msra.mxu1 %v3190_v4  ;;  %2820 = vmatmul.msk.f32.vlgmr.msra.gmra.mxu0 %vm509_vm2, %v4122_v2 }
 0x3df   : > { %2823 = vmatmul.msk.f32.vlgmr.msra.gmra.mxu1 %vm509_vm2, %v4122_v2 }
 0x3e2   : > { %v1699_v5 = vpop.f32.mrf.mxu0 }
 0x3e3   : > { %v1725_v6 = vpop.f32.mrf.mxu1  ;;  %v1700_v7 = vadd.f32 %v1699_v5, %v4109_v50  ;;  %v4206_v5 = vpop.permute.xlu2 %1817 }
 0x3e4   : > { %v1726_v15 = vadd.f32 %v1725_v6, %v4109_v50 }
 0x3e5   : > { %v1644_v10 = vpop.f32.mrf.mxu2 }
 0x3e6   : > { %v1670_v11 = vpop.f32.mrf.mxu3  ;;  %2821 = vmatmul.msk.f32.gmra.mxu0 %vm509_vm2, %v4131_v9  ;;  %v1645_v33 = vadd.f32 %v1644_v10, %v4113_v56 }
 0x3e7   : > { %2824 = vmatmul.msk.f32.gmra.mxu1 %vm509_vm2, %v4131_v9  ;;  %v1671_v35 = vadd.f32 %v1670_v11, %v4113_v56 }
 0x3ea   : > { %v1702_v12 = vpop.f32.mrf.mxu0 }
 0x3eb   : > { %v1703_v8 = vadd.f32 %v1702_v12, %v4107_v49  ;;  %v1728_v13 = vpop.f32.mrf.mxu1 }
 0x3ec   : > { %v1729_v16 = vadd.f32 %v1728_v13, %v4107_v49 }
 0x3ed   : > { %3191 = vtanh.f32 %v1703_v8  ;;  %v1647_v18 = vpop.f32.mrf.mxu2 }
 0x3ee   : > { %3193 = vtanh.f32 %v1729_v16  ;;  %v1673_v20 = vpop.f32.mrf.mxu3  ;;  %2822 = vmatmul.msk.f32.gmra.mxu0 %vm509_vm2, %v4142_v14  ;;  %v1648_v28 = vadd.f32 %v1647_v18, %v4109_v50  ;;  %v4215_v16 = vld [vmem:[%s4380_s1 + $0xa8] sm:$0xff] }
 0x3ef   : > { %3195 = vtanh.f32 %v1700_v7  ;;  %2825 = vmatmul.msk.f32.gmra.mxu1 %vm509_vm2, %v4142_v14  ;;  %v1674_v30 = vadd.f32 %v1673_v20, %v4109_v50 }
 0x3f0   : > { %3197 = vtanh.f32 %v1726_v15 }
 0x3f1   : > { %3199 = vtanh.f32 %v1697_v17 }
 0x3f2   : > { %3201 = vtanh.f32 %v1723_v19 }
 0x3f3   : > { %v3192_v23 = vpop.eup %3191 }
 0x3f4   : > { %v3194_v24 = vpop.eup %3193  ;;  %1956 = vmatpush.msrb.mxu0 %v3192_v23  ;;  %v4224_v23 = vld [vmem:[%s4380_s1 + $0xb0] sm:$0xff] }
 0x3f5   : > { %v3196_v25 = vpop.eup %3195  ;;  %1982 = vmatpush.msrb.mxu1 %v3194_v24  ;;  %v1650_v26 = vpop.f32.mrf.mxu2 }
 0x3f6   : > { %v3198_v22 = vpop.eup %3197  ;;  %v1651_v21 = vadd.f32 %v1650_v26, %v4107_v49  ;;  %v1676_v27 = vpop.f32.mrf.mxu3  ;;  %1957 = vmatpush.msrb.mxu0 %v3196_v25 }
 0x3f7   : > { %v3200_v29 = vpop.eup %3199  ;;  %v1677_v31 = vadd.f32 %v1676_v27, %v4107_v49  ;;  %1983 = vmatpush.msrb.mxu1 %v3198_v22 }
 0x3f8   : > { %v3202_v32 = vpop.eup %3201  ;;  %3203 = vtanh.f32 %v1651_v21  ;;  %1958 = vmatpush.msrb.mxu0 %v3200_v29  ;;  %v4235_v21 = vld [vmem:[%s4380_s1 + $0xb8] sm:$0xff] }
 0x3f9   : > { %3205 = vtanh.f32 %v1677_v31  ;;  %1984 = vmatpush.msrb.mxu1 %v3202_v32  ;;  %2832 = vmatmul.msk.f32.vlgmr.msrb.gmra.mxu0 %vm509_vm2, %v4122_v2 }
 0x3fa   : > { %3207 = vtanh.f32 %v1648_v28  ;;  %2835 = vmatmul.msk.f32.vlgmr.msrb.gmra.mxu1 %vm509_vm2, %v4122_v2 }
 0x3fb   : > { %3209 = vtanh.f32 %v1674_v30 }
 0x3fc   : > { %3211 = vtanh.f32 %v1645_v33 }
 0x3fd   : > { %3213 = vtanh.f32 %v1671_v35  ;;  %v1748_v38 = vpop.f32.mrf.mxu2 }
 0x3fe   : > { %v3204_v39 = vpop.eup %3203  ;;  %v1774_v41 = vpop.f32.mrf.mxu3  ;;  %v1749_v53 = vadd.f32 %v1748_v38, %v4113_v56 }
 0x3ff   : > { %v3206_v42 = vpop.eup %3205  ;;  %1904 = vmatpush.msra.mxu2 %v3204_v39  ;;  %v1775_v54 = vadd.f32 %v1774_v41, %v4113_v56 }
 0x400   : > { %v3208_v36 = vpop.eup %3207  ;;  %1930 = vmatpush.msra.mxu3 %v3206_v42 }
 0x401   : > { %v3210_v37 = vpop.eup %3209  ;;  %2833 = vmatmul.msk.f32.gmra.mxu0 %vm509_vm2, %v4131_v9  ;;  %1905 = vmatpush.msra.mxu2 %v3208_v36 }
 0x402   : > { %v3212_v43 = vpop.eup %3211  ;;  %2836 = vmatmul.msk.f32.gmra.mxu1 %vm509_vm2, %v4131_v9  ;;  %1931 = vmatpush.msra.mxu3 %v3210_v37 }
 0x403   : > { %v3214_v34 = vpop.eup %3213  ;;  %1906 = vmatpush.msra.mxu2 %v3212_v43 }
 0x404   : > { %1932 = vmatpush.msra.mxu3 %v3214_v34  ;;  %2826 = vmatmul.msk.f32.vlgmr.msra.gmra.mxu2 %vm509_vm2, %v4122_v2 }
 0x405   : > { %2829 = vmatmul.msk.f32.vlgmr.msra.gmra.mxu3 %vm509_vm2, %v4122_v2  ;;  %v1751_v44 = vpop.f32.mrf.mxu2 }
 0x406   : > { %v1777_v45 = vpop.f32.mrf.mxu3  ;;  %v1752_v40 = vadd.f32 %v1751_v44, %v4109_v50 }
 0x407   : > { %v1778_v51 = vadd.f32 %v1777_v45, %v4109_v50 }
 0x409   : > { %2834 = vmatmul.msk.f32.gmra.mxu0 %vm509_vm2, %v4142_v14 }
 0x40a   : > { %2837 = vmatmul.msk.f32.gmra.mxu1 %vm509_vm2, %v4142_v14 }
 0x40c   : > { %2827 = vmatmul.msk.f32.gmra.mxu2 %vm509_vm2, %v4131_v9 }
 0x40d   : > { %2830 = vmatmul.msk.f32.gmra.mxu3 %vm509_vm2, %v4131_v9  ;;  %v1754_v46 = vpop.f32.mrf.mxu2 }
 0x40e   : > { %v1755_v47 = vadd.f32 %v1754_v46, %v4107_v49  ;;  %v1780_v48 = vpop.f32.mrf.mxu3 }
 0x40f   : > { %v1781_v52 = vadd.f32 %v1780_v48, %v4107_v49 }
 0x410   : > { %3215 = vtanh.f32 %v1755_v47 }
 0x411   : > { %3217 = vtanh.f32 %v1781_v52 }
 0x412   : > { %3219 = vtanh.f32 %v1752_v40 }
 0x413   : > { %3221 = vtanh.f32 %v1778_v51 }
 0x414   : > { %3223 = vtanh.f32 %v1749_v53  ;;  %2828 = vmatmul.msk.f32.gmra.mxu2 %vm509_vm2, %v4142_v14 }
 0x415   : > { %3225 = vtanh.f32 %v1775_v54  ;;  %2831 = vmatmul.msk.f32.gmra.mxu3 %vm509_vm2, %v4142_v14 }
 0x416   : > { %v3216_v57 = vpop.eup %3215 }
 0x417   : > { %v3218_v50 = vpop.eup %3217  ;;  %2008 = vmatpush.msrb.mxu2 %v3216_v57 }
 0x418   : > { %v3220_v49 = vpop.eup %3219  ;;  %2034 = vmatpush.msrb.mxu3 %v3218_v50 }
 0x419   : > { %v3222_v58 = vpop.eup %3221  ;;  %2009 = vmatpush.msrb.mxu2 %v3220_v49 }
 0x41a   : > { %v3224_v59 = vpop.eup %3223  ;;  %2035 = vmatpush.msrb.mxu3 %v3222_v58 }
 0x41b   : > { %v3226_v56 = vpop.eup %3225  ;;  %2010 = vmatpush.msrb.mxu2 %v3224_v59 }
 0x41c   : > { %2036 = vmatpush.msrb.mxu3 %v3226_v56  ;;  %2838 = vmatmul.msk.f32.vlgmr.msrb.gmra.mxu2 %vm509_vm2, %v4122_v2 }
 0x41d   : > { %2841 = vmatmul.msk.f32.vlgmr.msrb.gmra.mxu3 %vm509_vm2, %v4122_v2 }
 0x424   : > { %2839 = vmatmul.msk.f32.gmra.mxu2 %vm509_vm2, %v4131_v9 }
 0x425   : > { %2842 = vmatmul.msk.f32.gmra.mxu3 %vm509_vm2, %v4131_v9 }
 0x42c   : > { %2840 = vmatmul.msk.f32.gmra.mxu2 %vm509_vm2, %v4142_v14 }
 0x42d   : > { %2843 = vmatmul.msk.f32.gmra.mxu3 %vm509_vm2, %v4142_v14 }
 0x45b   : > { %v1856_v60 = vpop.f32.mrf.mxu0 }
 0x45c   : > { %v1882_v61 = vpop.f32.mrf.mxu1  ;;  %v1857_v10 = vadd.f32 %v1856_v60, %v4206_v5 }
 0x45d   : > { %v1883_v11 = vadd.f32 %v1882_v61, %v4206_v5 }
 0x463   : > { %v1859_v55 = vpop.f32.mrf.mxu0 }
 0x464   : > { %v1885_v62 = vpop.f32.mrf.mxu1  ;;  %v1860_v2 = vadd.f32 %v1859_v55, %v4202_v63 }
 0x465   : > { %v1886_v6 = vadd.f32 %v1885_v62, %v4202_v63 }
 0x46b   : > { %v1862_v1 = vpop.f32.mrf.mxu0 }
 0x46c   : > { %v1863_v3 = vadd.f32 %v1862_v1, %v4200_v0  ;;  %v1888_v4 = vpop.f32.mrf.mxu1 }
 0x46d   : > { %v1889_v9 = vadd.f32 %v1888_v4, %v4200_v0 }
 0x46e   : > { %3227 = vtanh.f32 %v1863_v3 }
 0x46f   : > { %3229 = vtanh.f32 %v1889_v9 }
 0x470   : > { %3231 = vtanh.f32 %v1860_v2 }
 0x471   : > { %3233 = vtanh.f32 %v1886_v6 }
 0x472   : > { %3235 = vtanh.f32 %v1857_v10 }
 0x473   : > { %3237 = vtanh.f32 %v1883_v11 }
 0x474   : > { %v3228_v12 = vpop.eup %3227 }
 0x475   : > { %v3230_v7 = vpop.eup %3229  ;;  %2116 = vmatpush.msra.mxu0 %v3228_v12 }
 0x476   : > { %v3232_v8 = vpop.eup %3231  ;;  %v1960_v13 = vpop.f32.mrf.mxu0  ;;  %2142 = vmatpush.msra.mxu1 %v3230_v7 }
 0x477   : > { %v3234_v14 = vpop.eup %3233  ;;  %v1986_v15 = vpop.f32.mrf.mxu1  ;;  %2117 = vmatpush.msra.mxu0 %v3232_v8  ;;  %v1961_v31 = vadd.f32 %v1960_v13, %v4206_v5 }
 0x478   : > { %v3236_v17 = vpop.eup %3235  ;;  %2143 = vmatpush.msra.mxu1 %v3234_v14  ;;  %v1987_v32 = vadd.f32 %v1986_v15, %v4206_v5  ;;  %v4293_v13 = vpop.permute.xlu0 %2091 }
 0x479   : > { %v3238_v18 = vpop.eup %3237  ;;  %2118 = vmatpush.msra.mxu0 %v3236_v17  ;;  %v4295_v14 = vpop.permute.xlu1 %2086 }
 0x47a   : > { %2144 = vmatpush.msra.mxu1 %v3238_v18  ;;  %2850 = vmatmul.msk.f32.vlgmr.msra.gmra.mxu0 %vm509_vm2, %v4215_v16 }
 0x47b   : > { %2853 = vmatmul.msk.f32.vlgmr.msra.gmra.mxu1 %vm509_vm2, %v4215_v16 }
 0x47e   : > { %v1963_v19 = vpop.f32.mrf.mxu0 }
 0x47f   : > { %v1989_v20 = vpop.f32.mrf.mxu1  ;;  %v1964_v25 = vadd.f32 %v1963_v19, %v4202_v63  ;;  %v4299_v19 = vpop.permute.xlu2 %2081 }
 0x480   : > { %v1990_v27 = vadd.f32 %v1989_v20, %v4202_v63 }
 0x482   : > { %2851 = vmatmul.msk.f32.gmra.mxu0 %vm509_vm2, %v4224_v23 }
 0x483   : > { %2854 = vmatmul.msk.f32.gmra.mxu1 %vm509_vm2, %v4224_v23 }
 0x486   : > { %v1966_v24 = vpop.f32.mrf.mxu0 }
 0x487   : > { %v1967_v26 = vadd.f32 %v1966_v24, %v4200_v0  ;;  %v1992_v22 = vpop.f32.mrf.mxu1  ;;  %v1908_v28 = vpop.f32.mrf.mxu2 }
 0x488   : > { %v1993_v29 = vadd.f32 %v1992_v22, %v4200_v0  ;;  %v1934_v30 = vpop.f32.mrf.mxu3  ;;  %v1909_v47 = vadd.f32 %v1908_v28, %v4206_v5 }
 0x489   : > { %3239 = vtanh.f32 %v1967_v26  ;;  %v1935_v48 = vadd.f32 %v1934_v30, %v4206_v5  ;;  %v4308_v30 = vld [vmem:[%s4380_s1 + $0xc0] sm:$0xff] }
 0x48a   : > { %3241 = vtanh.f32 %v1993_v29  ;;  %2852 = vmatmul.msk.f32.gmra.mxu0 %vm509_vm2, %v4235_v21 }
 0x48b   : > { %3243 = vtanh.f32 %v1964_v25  ;;  %2855 = vmatmul.msk.f32.gmra.mxu1 %vm509_vm2, %v4235_v21 }
 0x48c   : > { %3245 = vtanh.f32 %v1990_v27 }
 0x48d   : > { %3247 = vtanh.f32 %v1961_v31 }
 0x48e   : > { %3249 = vtanh.f32 %v1987_v32 }
 0x48f   : > { %v3240_v33 = vpop.eup %3239  ;;  %v1911_v35 = vpop.f32.mrf.mxu2 }
 0x490   : > { %v3242_v38 = vpop.eup %3241  ;;  %v1937_v39 = vpop.f32.mrf.mxu3  ;;  %2220 = vmatpush.msrb.mxu0 %v3240_v33  ;;  %v1912_v34 = vadd.f32 %v1911_v35, %v4202_v63 }
 0x491   : > { %v3244_v41 = vpop.eup %3243  ;;  %2246 = vmatpush.msrb.mxu1 %v3242_v38  ;;  %v1938_v46 = vadd.f32 %v1937_v39, %v4202_v63 }
 0x492   : > { %v3246_v42 = vpop.eup %3245  ;;  %2221 = vmatpush.msrb.mxu0 %v3244_v41 }
 0x493   : > { %v3248_v36 = vpop.eup %3247  ;;  %2247 = vmatpush.msrb.mxu1 %v3246_v42 }
 0x494   : > { %v3250_v37 = vpop.eup %3249  ;;  %2222 = vmatpush.msrb.mxu0 %v3248_v36 }
 0x495   : > { %2248 = vmatpush.msrb.mxu1 %v3250_v37  ;;  %2862 = vmatmul.msk.f32.vlgmr.msrb.gmra.mxu0 %vm509_vm2, %v4215_v16 }
 0x496   : > { %2865 = vmatmul.msk.f32.vlgmr.msrb.gmra.mxu1 %vm509_vm2, %v4215_v16 }
 0x497   : > { %v1914_v43 = vpop.f32.mrf.mxu2 }
 0x498   : > { %v1915_v44 = vadd.f32 %v1914_v43, %v4200_v0  ;;  %v1940_v45 = vpop.f32.mrf.mxu3 }
 0x499   : > { %v1941_v40 = vadd.f32 %v1940_v45, %v4200_v0 }
 0x49a   : > { %3251 = vtanh.f32 %v1915_v44 }
 0x49b   : > { %3253 = vtanh.f32 %v1941_v40 }
 0x49c   : > { %3255 = vtanh.f32 %v1912_v34 }
 0x49d   : > { %3257 = vtanh.f32 %v1938_v46  ;;  %2863 = vmatmul.msk.f32.gmra.mxu0 %vm509_vm2, %v4224_v23 }
 0x49e   : > { %3259 = vtanh.f32 %v1909_v47  ;;  %2866 = vmatmul.msk.f32.gmra.mxu1 %vm509_vm2, %v4224_v23 }
 0x49f   : > { %3261 = vtanh.f32 %v1935_v48  ;;  %v2012_v51 = vpop.f32.mrf.mxu2 }
 0x4a0   : > { %v3252_v52 = vpop.eup %3251  ;;  %v2038_v53 = vpop.f32.mrf.mxu3  ;;  %v2013_v3 = vadd.f32 %v2012_v51, %v4206_v5 }
 0x4a1   : > { %v3254_v54 = vpop.eup %3253  ;;  %2168 = vmatpush.msra.mxu2 %v3252_v52  ;;  %v2039_v4 = vadd.f32 %v2038_v53, %v4206_v5 }
 0x4a2   : > { %v3256_v57 = vpop.eup %3255  ;;  %2194 = vmatpush.msra.mxu3 %v3254_v54 }
 0x4a3   : > { %v3258_v50 = vpop.eup %3257  ;;  %2169 = vmatpush.msra.mxu2 %v3256_v57 }
 0x4a4   : > { %v3260_v49 = vpop.eup %3259  ;;  %2195 = vmatpush.msra.mxu3 %v3258_v50 }
 0x4a5   : > { %v3262_v58 = vpop.eup %3261  ;;  %2864 = vmatmul.msk.f32.gmra.mxu0 %vm509_vm2, %v4235_v21  ;;  %2170 = vmatpush.msra.mxu2 %v3260_v49 }
 0x4a6   : > { %2867 = vmatmul.msk.f32.gmra.mxu1 %vm509_vm2, %v4235_v21  ;;  %2196 = vmatpush.msra.mxu3 %v3262_v58 }
 0x4a7   : > { %2856 = vmatmul.msk.f32.vlgmr.msra.gmra.mxu2 %vm509_vm2, %v4215_v16  ;;  %2859 = vmatmul.msk.f32.vlgmr.msra.gmra.mxu3 %vm509_vm2, %v4215_v16  ;;  %v2015_v59 = vpop.f32.mrf.mxu2 }
 0x4a8   : > { %v2041_v56 = vpop.f32.mrf.mxu3  ;;  %v2016_v61 = vadd.f32 %v2015_v59, %v4202_v63 }
 0x4a9   : > { %v2042_v1 = vadd.f32 %v2041_v56, %v4202_v63 }
 0x4af   : > { %2857 = vmatmul.msk.f32.gmra.mxu2 %vm509_vm2, %v4224_v23  ;;  %2860 = vmatmul.msk.f32.gmra.mxu3 %vm509_vm2, %v4224_v23  ;;  %v2018_v60 = vpop.f32.mrf.mxu2 }
 0x4b0   : > { %v2019_v55 = vadd.f32 %v2018_v60, %v4200_v0  ;;  %v2044_v62 = vpop.f32.mrf.mxu3 }
 0x4b1   : > { %v2045_v2 = vadd.f32 %v2044_v62, %v4200_v0 }
 0x4b2   : > { %3263 = vtanh.f32 %v2019_v55 }
 0x4b3   : > { %3265 = vtanh.f32 %v2045_v2 }
 0x4b4   : > { %3267 = vtanh.f32 %v2016_v61 }
 0x4b5   : > { %3269 = vtanh.f32 %v2042_v1 }
 0x4b6   : > { %3271 = vtanh.f32 %v2013_v3 }
 0x4b7   : > { %3273 = vtanh.f32 %v2039_v4  ;;  %2858 = vmatmul.msk.f32.gmra.mxu2 %vm509_vm2, %v4235_v21  ;;  %2861 = vmatmul.msk.f32.gmra.mxu3 %vm509_vm2, %v4235_v21 }
 0x4b8   : > { %v3264_v6 = vpop.eup %3263 }
 0x4b9   : > { %v3266_v63 = vpop.eup %3265  ;;  %2272 = vmatpush.msrb.mxu2 %v3264_v6 }
 0x4ba   : > { %v3268_v0 = vpop.eup %3267  ;;  %2298 = vmatpush.msrb.mxu3 %v3266_v63 }
 0x4bb   : > { %v3270_v9 = vpop.eup %3269  ;;  %2273 = vmatpush.msrb.mxu2 %v3268_v0 }
 0x4bc   : > { %v3272_v10 = vpop.eup %3271  ;;  %2299 = vmatpush.msrb.mxu3 %v3270_v9 }
 0x4bd   : > { %v3274_v5 = vpop.eup %3273  ;;  %2274 = vmatpush.msrb.mxu2 %v3272_v10 }
 0x4be   : > { %2300 = vmatpush.msrb.mxu3 %v3274_v5 }
 0x4bf   : > { %2868 = vmatmul.msk.f32.vlgmr.msrb.gmra.mxu2 %vm509_vm2, %v4215_v16  ;;  %2871 = vmatmul.msk.f32.vlgmr.msrb.gmra.mxu3 %vm509_vm2, %v4215_v16 }
 0x4c7   : > { %2869 = vmatmul.msk.f32.gmra.mxu2 %vm509_vm2, %v4224_v23  ;;  %2872 = vmatmul.msk.f32.gmra.mxu3 %vm509_vm2, %v4224_v23 }
 0x4cf   : > { %2870 = vmatmul.msk.f32.gmra.mxu2 %vm509_vm2, %v4235_v21  ;;  %2873 = vmatmul.msk.f32.gmra.mxu3 %vm509_vm2, %v4235_v21 }
 0x4f7   : > { %v2120_v11 = vpop.f32.mrf.mxu0 }
 0x4f8   : > { %v2146_v12 = vpop.f32.mrf.mxu1  ;;  %v2121_v24 = vadd.f32 %v2120_v11, %v4299_v19 }
 0x4f9   : > { %v2147_v25 = vadd.f32 %v2146_v12, %v4299_v19 }
 0x4ff   : > { %v2123_v7 = vpop.f32.mrf.mxu0 }
 0x500   : > { %v2149_v8 = vpop.f32.mrf.mxu1  ;;  %v2124_v16 = vadd.f32 %v2123_v7, %v4295_v14 }
 0x501   : > { %v2150_v20 = vadd.f32 %v2149_v8, %v4295_v14 }
 0x507   : > { %v2126_v15 = vpop.f32.mrf.mxu0 }
 0x508   : > { %v2127_v17 = vadd.f32 %v2126_v15, %v4293_v13  ;;  %v2152_v18 = vpop.f32.mrf.mxu1 }
 0x509   : > { %v2153_v23 = vadd.f32 %v2152_v18, %v4293_v13 }
 0x50a   : > { %3275 = vtanh.f32 %v2127_v17 }
 0x50b   : > { %3277 = vtanh.f32 %v2153_v23 }
 0x50c   : > { %3279 = vtanh.f32 %v2124_v16 }
 0x50d   : > { %3281 = vtanh.f32 %v2150_v20 }
 0x50e   : > { %3283 = vtanh.f32 %v2121_v24 }
 0x50f   : > { %3285 = vtanh.f32 %v2147_v25 }
 0x510   : > { %v3276_v26 = vpop.eup %3275 }
 0x511   : > { %v3278_v22 = vpop.eup %3277  ;;  %2360 = vmatpush.msra.mxu0 %v3276_v26 }
 0x512   : > { %v3280_v28 = vpop.eup %3279  ;;  %v2224_v21 = vpop.f32.mrf.mxu0  ;;  %2380 = vmatpush.msra.mxu1 %v3278_v22 }
 0x513   : > { %v3282_v27 = vpop.eup %3281  ;;  %v2250_v29 = vpop.f32.mrf.mxu1  ;;  %2361 = vmatpush.msra.mxu0 %v3280_v28  ;;  %v2225_v43 = vadd.f32 %v2224_v21, %v4299_v19 }
 0x514   : > { %v3284_v31 = vpop.eup %3283  ;;  %2381 = vmatpush.msra.mxu1 %v3282_v27  ;;  %v2251_v34 = vadd.f32 %v2250_v29, %v4299_v19  ;;  %v2342_v22 = vpop.permute.xlu0 %2341 }
 0x515   : > { %v3286_v32 = vpop.eup %3285  ;;  %2362 = vmatpush.msra.mxu0 %v3284_v31 }
 0x516   : > { %2382 = vmatpush.msra.mxu1 %v3286_v32  ;;  %2876 = vmatmul.msk.f32.vlgmr.msra.gmra.mxu0 %vm509_vm2, %v4308_v30 }
 0x517   : > { %2877 = vmatmul.msk.f32.vlgmr.msra.gmra.mxu1 %vm509_vm2, %v4308_v30 }
 0x51a   : > { %v2227_v33 = vpop.f32.mrf.mxu0 }
 0x51b   : > { %v2253_v35 = vpop.f32.mrf.mxu1  ;;  %v2228_v39 = vadd.f32 %v2227_v33, %v4295_v14 }
 0x51c   : > { %v2254_v36 = vadd.f32 %v2253_v35, %v4295_v14 }
 0x522   : > { %v2230_v38 = vpop.f32.mrf.mxu0 }
 0x523   : > { %v2231_v41 = vadd.f32 %v2230_v38, %v4293_v13  ;;  %v2256_v42 = vpop.f32.mrf.mxu1 }
 0x524   : > { %v2257_v37 = vadd.f32 %v2256_v42, %v4293_v13 }
 0x525   : > { %3287 = vtanh.f32 %v2231_v41 }
 0x526   : > { %3289 = vtanh.f32 %v2257_v37 }
 0x527   : > { %3291 = vtanh.f32 %v2228_v39 }
 0x528   : > { %3293 = vtanh.f32 %v2254_v36 }
 0x529   : > { %3295 = vtanh.f32 %v2225_v43 }
 0x52a   : > { %3297 = vtanh.f32 %v2251_v34  ;;  %v2172_v44 = vpop.f32.mrf.mxu2  ;;  %v2198_v45 = vpop.f32.mrf.mxu3 }
 0x52b   : > { %v3288_v46 = vpop.eup %3287  ;;  %v2173_v60 = vadd.f32 %v2172_v44, %v4299_v19  ;;  %v2199_v61 = vadd.f32 %v2198_v45, %v4299_v19 }
 0x52c   : > { %v3290_v40 = vpop.eup %3289  ;;  %2440 = vmatpush.msrb.mxu0 %v3288_v46 }
 0x52d   : > { %v3292_v47 = vpop.eup %3291  ;;  %2460 = vmatpush.msrb.mxu1 %v3290_v40 }
 0x52e   : > { %v3294_v48 = vpop.eup %3293  ;;  %2441 = vmatpush.msrb.mxu0 %v3292_v47 }
 0x52f   : > { %v3296_v51 = vpop.eup %3295  ;;  %2461 = vmatpush.msrb.mxu1 %v3294_v48 }
 0x530   : > { %v3298_v52 = vpop.eup %3297  ;;  %2442 = vmatpush.msrb.mxu0 %v3296_v51 }
 0x531   : > { %2462 = vmatpush.msrb.mxu1 %v3298_v52  ;;  %2880 = vmatmul.msk.f32.vlgmr.msrb.gmra.mxu0 %vm509_vm2, %v4308_v30 }
 0x532   : > { %2881 = vmatmul.msk.f32.vlgmr.msrb.gmra.mxu1 %vm509_vm2, %v4308_v30  ;;  %v2175_v53 = vpop.f32.mrf.mxu2  ;;  %v2201_v54 = vpop.f32.mrf.mxu3 }
 0x533   : > { %v2176_v49 = vadd.f32 %v2175_v53, %v4295_v14  ;;  %v2202_v56 = vadd.f32 %v2201_v54, %v4295_v14 }
 0x53a   : > { %v2178_v57 = vpop.f32.mrf.mxu2  ;;  %v2204_v50 = vpop.f32.mrf.mxu3 }
 0x53b   : > { %v2179_v58 = vadd.f32 %v2178_v57, %v4293_v13  ;;  %v2205_v59 = vadd.f32 %v2204_v50, %v4293_v13 }
 0x53d   : > { %3299 = vtanh.f32 %v2179_v58 }
 0x53e   : > { %3301 = vtanh.f32 %v2205_v59 }
 0x53f   : > { %3303 = vtanh.f32 %v2176_v49 }
 0x540   : > { %3305 = vtanh.f32 %v2202_v56 }
 0x541   : > { %3307 = vtanh.f32 %v2173_v60 }
 0x542   : > { %3309 = vtanh.f32 %v2199_v61  ;;  %v2276_v55 = vpop.f32.mrf.mxu2  ;;  %v2302_v62 = vpop.f32.mrf.mxu3 }
 0x543   : > { %v3300_v1 = vpop.eup %3299  ;;  %v2277_v15 = vadd.f32 %v2276_v55, %v4299_v19  ;;  %v2303_v16 = vadd.f32 %v2302_v62, %v4299_v19 }
 0x544   : > { %v3302_v2 = vpop.eup %3301  ;;  %2400 = vmatpush.msra.mxu2 %v3300_v1 }
 0x545   : > { %v3304_v3 = vpop.eup %3303  ;;  %2420 = vmatpush.msra.mxu3 %v3302_v2 }
 0x546   : > { %v3306_v4 = vpop.eup %3305  ;;  %2401 = vmatpush.msra.mxu2 %v3304_v3 }
 0x547   : > { %v3308_v6 = vpop.eup %3307  ;;  %2421 = vmatpush.msra.mxu3 %v3306_v4 }
 0x548   : > { %v3310_v63 = vpop.eup %3309  ;;  %2402 = vmatpush.msra.mxu2 %v3308_v6 }
 0x549   : > { %2422 = vmatpush.msra.mxu3 %v3310_v63  ;;  %2878 = vmatmul.msk.f32.vlgmr.msra.gmra.mxu2 %vm509_vm2, %v4308_v30 }
 0x54a   : > { %2879 = vmatmul.msk.f32.vlgmr.msra.gmra.mxu3 %vm509_vm2, %v4308_v30  ;;  %v2279_v0 = vpop.f32.mrf.mxu2  ;;  %v2305_v9 = vpop.f32.mrf.mxu3 }
 0x54b   : > { %v2280_v11 = vadd.f32 %v2279_v0, %v4295_v14  ;;  %v2306_v8 = vadd.f32 %v2305_v9, %v4295_v14 }
 0x552   : > { %v2282_v10 = vpop.f32.mrf.mxu2  ;;  %v2308_v5 = vpop.f32.mrf.mxu3 }
 0x553   : > { %v2283_v12 = vadd.f32 %v2282_v10, %v4293_v13  ;;  %v2309_v7 = vadd.f32 %v2308_v5, %v4293_v13 }
 0x555   : > { %3311 = vtanh.f32 %v2283_v12 }
 0x556   : > { %3313 = vtanh.f32 %v2309_v7 }
 0x557   : > { %3315 = vtanh.f32 %v2280_v11 }
 0x558   : > { %3317 = vtanh.f32 %v2306_v8 }
 0x559   : > { %3319 = vtanh.f32 %v2277_v15 }
 0x55a   : > { %3321 = vtanh.f32 %v2303_v16 }
 0x55b   : > { %v3312_v17 = vpop.eup %3311 }
 0x55c   : > { %v3314_v18 = vpop.eup %3313  ;;  %2480 = vmatpush.msrb.mxu2 %v3312_v17 }
 0x55d   : > { %v3316_v20 = vpop.eup %3315  ;;  %2500 = vmatpush.msrb.mxu3 %v3314_v18 }
 0x55e   : > { %v3318_v23 = vpop.eup %3317  ;;  %2481 = vmatpush.msrb.mxu2 %v3316_v20 }
 0x55f   : > { %v3320_v13 = vpop.eup %3319  ;;  %2501 = vmatpush.msrb.mxu3 %v3318_v23 }
 0x560   : > { %v3322_v14 = vpop.eup %3321  ;;  %2482 = vmatpush.msrb.mxu2 %v3320_v13 }
 0x561   : > { %2502 = vmatpush.msrb.mxu3 %v3322_v14  ;;  %2882 = vmatmul.msk.f32.vlgmr.msrb.gmra.mxu2 %vm509_vm2, %v4308_v30 }
 0x562   : > { %2883 = vmatmul.msk.f32.vlgmr.msrb.gmra.mxu3 %vm509_vm2, %v4308_v30 }
 0x593   : > { %v2364_v19 = vpop.f32.mrf.mxu0 }
 0x594   : > { %v2384_v24 = vpop.f32.mrf.mxu1  ;;  %v2365_v44 = vadd.f32 %v2364_v19, %v2342_v22 }
 0x595   : > { %v2385_v31 = vadd.f32 %v2384_v24, %v2342_v22 }
 0x597   : > { %v2515_v42 = vrot.slane %v2385_v31, 7 }
 0x599   : > { %v2523_v40 = vsel %vm2522_vm4, %v2365_v44, %v2515_v42 }
 0x5ae   : > { %v2444_v28 = vpop.f32.mrf.mxu0 }
 0x5af   : > { %v2464_v21 = vpop.f32.mrf.mxu1  ;;  %v2445_v32 = vadd.f32 %v2444_v28, %v2342_v22 }
 0x5b0   : > { %v2465_v33 = vadd.f32 %v2464_v21, %v2342_v22 }
 0x5b1   : > { %v2518_v36 = vrot.slane %v2445_v32, 4 }
 0x5b2   : > { %v2519_v37 = vrot.slane %v2465_v33, 3 }
 0x5b4   : > { %v2528_v47 = vsel %vm2527_vm5, %v2518_v36, %v2519_v37 }
 0x5cc   : > { %v2404_v25 = vpop.f32.mrf.mxu2 }
 0x5cd   : > { %v2424_v26 = vpop.f32.mrf.mxu3  ;;  %v2405_v27 = vadd.f32 %v2404_v25, %v2342_v22 }
 0x5ce   : > { %v2425_v29 = vadd.f32 %v2424_v26, %v2342_v22 }
 0x5cf   : > { %v2516_v35 = vrot.slane %v2405_v27, 6 }
 0x5d0   : > { %v2517_v38 = vrot.slane %v2425_v29, 5 }
 0x5d2   : > { %v2525_v45 = vsel %vm2524_vm3, %v2516_v35, %v2517_v38 }
 0x5d3   : > { %v2526_v51 = vsel %vm237_vm0, %v2523_v40, %v2525_v45 }
 0x5e4   : > { %v2484_v39 = vpop.f32.mrf.mxu2 }
 0x5e5   : > { %v2485_v41 = vadd.f32 %v2484_v39, %v2342_v22  ;;  %v2504_v30 = vpop.f32.mrf.mxu3 }
 0x5e6   : > { %v2505_v43 = vadd.f32 %v2504_v30, %v2342_v22 }
 0x5e7   : > { %v2520_v34 = vrot.slane %v2485_v41, 2 }
 0x5e8   : > { %v2521_v46 = vrot.slane %v2505_v43, 1 }
 0x5ea   : > { %v2530_v48 = vsel %vm2529_vm6, %v2520_v34, %v2521_v46 }
 0x5eb   : > { %v2532_v52 = vsel %vm2531_vm7, %v2528_v47, %v2530_v48 }
 0x5ec   : > { %v2534_v53 = vsel %vm2533_vm8, %v2526_v51, %v2532_v52 }
 0x5ed   : > { %2536 = vst [vmem:[%s188_s16] sm:$0xff] %v2534_v53 }
 0x5ee   : > { %3380 = shalt.err (!%p3377_p4)
}
 0x5ef   : > { %2891 = dma.vmem_to_hbm [thread:$0]  (%p3492_p11), %s2551_s7, 128, %s2553_s23, %s2538_s8  }
 0x5f0 PF: > { %s2564_s26 = sand.u32 1, %s3407_s12   ;;  %p4388_p7 = scmp.ge.s32.totalorder %s3419_s15, 2 }
 0x5f1   : > { %s2565_s27 = scalar_lea.sflag [#allocation4], %s2564_s26 }
 0x5f2   : > { %p2898_p5 = pnand %p4388_p7, %p3496_p12 }
 0x5f4   : > { %p2899_p8 = pneg %p2898_p5 }
 0x5f6   : > { %3402 = dma.done.wait (%p2899_p8), %s2565_s27, 128  }
 0x5f7   : > { %3404 = vsyncadd (%p2899_p8), %s2565_s27, 4294967168  ;;  %p16_p10 = scmp.ge.s32.totalorder %s3467_s18, 4   ;;  %s4389_s12 = smov %s3411_s13 }
 0x5f8   : > { %s4390_s13 = smov %s3415_s14  ;;  %s4391_s14 = smov %s3479_s21 }
 0x5f9   : > { %s4392_s15 = smov %s3467_s18  ;;  %18 = sbr.rel (!%p16_p10) target bundleno = 5 (0x5), region = 94 }
 0x5fe   :  { %2571 = vsyncpa [#allocation3], 1 }
 0x5ff   :  { %2573 = vsyncpa [#allocation3 + $0x1], 1 }
 0x600   :  { %2574 = vsyncpa [#allocation4], 1 }
 0x601   :  { %2576 = vsyncpa [#allocation4 + $0x1], 1 }

</bundles_post_ra>
